<compile_context>
chip_gen: v7x
topology: tpu7x:2x2x1
jax: 0.10.0
libtpu: 0.0.40
codegen_flags: <defaults>
</compile_context>

<pallas_src>
import math
import functools

import jax
import jax.numpy as jnp
from jax.experimental import pallas as pl
from jax.experimental.pallas import tpu as pltpu


# ---------------------------------------------------------------------------
# Helpers
# ---------------------------------------------------------------------------
def _layernorm_f32(x_f32, w_f32, eps=1e-5):
    """torch.nn.LayerNorm(bias=False), eps=1e-5, f32 statistics."""
    mu = jnp.mean(x_f32, axis=-1, keepdims=True)
    xc = x_f32 - mu
    var = jnp.mean(xc * xc, axis=-1, keepdims=True)
    return xc * jax.lax.rsqrt(var + eps) * w_f32


_VMEM_LIMIT_CACHE = None


def _vmem_limit_bytes():
    """~100 MiB on v5e/v6e (128 MiB physical), ~54 MiB on v7x (64 MiB physical)."""
    global _VMEM_LIMIT_CACHE
    if _VMEM_LIMIT_CACHE is None:
        try:
            cap = pltpu.get_tpu_info().vmem_capacity_bytes
        except Exception:
            cap = 128 * 1024 * 1024
        _VMEM_LIMIT_CACHE = min(100 * 1024 * 1024, int(cap * 0.85))
    return _VMEM_LIMIT_CACHE


_SINGLE_BUFFER_OK = None


def _single_buffer_weights_supported():
    """Probe once whether pipeline_mode=pl.Buffered(1) is accepted by this JAX build."""
    global _SINGLE_BUFFER_OK
    if _SINGLE_BUFFER_OK is not None:
        return _SINGLE_BUFFER_OK
    try:
        def _probe_kernel(w_ref, o_ref):
            o_ref[...] = w_ref[...] * 2.0

        w = jnp.ones((8, 128), jnp.float32)
        out = pl.pallas_call(
            _probe_kernel,
            out_shape=jax.ShapeDtypeStruct((16, 128), jnp.float32),
            grid=(2,),
            in_specs=[pl.BlockSpec((8, 128), lambda i: (0, 0),
                                   pipeline_mode=pl.Buffered(1))],
            out_specs=pl.BlockSpec((8, 128), lambda i: (i, 0)),
        )(w)
        jax.block_until_ready(out)
        _SINGLE_BUFFER_OK = True
    except Exception:
        _SINGLE_BUFFER_OK = False
    return _SINGLE_BUFFER_OK


def _const_weight_spec(shape):
    """BlockSpec for a weight whose block index never changes across a 1-D grid.

    Single-buffered when supported: the index map is constant, so double buffering
    buys nothing and only doubles the weight VMEM footprint.
    """
    n = len(shape)
    idx = lambda b, _n=n: (0,) * _n
    if _single_buffer_weights_supported():
        return pl.BlockSpec(shape, idx, pipeline_mode=pl.Buffered(1))
    return pl.BlockSpec(shape, idx)


def _pick_q_tile(t):
    return 128 if t % 128 == 0 else t


def _pick_token_tile(n):
    if n <= 1024:
        return n
    for cand in (1024, 512, 256, 128, 64, 32, 16, 8):
        if n % cand == 0:
            return cand
    return n


def _pick_vocab_tile(v):
    # Largest lane-aligned (multiple-of-128) divisor of V, capped at 2048.
    for cand in range(2048, 127, -128):
        if v % cand == 0:
            return cand
    # TODO(synk): for vocab sizes with no multiple-of-128 divisor (e.g. 50257), pad the
    # tied embedding to a multiple of 128 at init instead of taking a full-V block.
    return v


# ---------------------------------------------------------------------------
# Fused transformer block kernel:
#   LN1 -> QKV proj -> causal MHA (query-tiled, head-batched) -> out proj -> residual
#   -> LN2 -> MLP (exact-erf GELU) -> residual
# Grid iterates over the batch dimension; each step processes one (T, E) slab.
# Weights arrive pre-transposed (in_features, out_features), bf16; the 1/sqrt(dh)
# attention scale is already folded into the q-columns of wqkv.
# ---------------------------------------------------------------------------
def transformer_block_kernel(x_ref, ln1w_ref, wqkv_ref, wo_ref, ln2w_ref,
                             w1_ref, w2_ref, o_ref, *, num_heads, q_tile):
    x = x_ref[0].astype(jnp.float32)                        # (T, E) residual stream, f32
    T, E = x.shape
    H = num_heads
    dh = E // H

    # --- LayerNorm 1 (f32 stats) -> bf16 MXU operand; fused QKV projection ---
    z = _layernorm_f32(x, ln1w_ref[...].astype(jnp.float32)).astype(jnp.bfloat16)
    qkv = jnp.dot(z, wqkv_ref[...], preferred_element_type=jnp.float32)      # (T, 3E) f32

    # bf16 cast BEFORE the (T,E)->(H,T,dh) relayout: only bf16 bytes are shuffled.
    q = jnp.swapaxes(qkv[:, :E].astype(jnp.bfloat16).reshape(T, H, dh), 0, 1)
    k = jnp.swapaxes(qkv[:, E:2 * E].astype(jnp.bfloat16).reshape(T, H, dh), 0, 1)
    v = jnp.swapaxes(qkv[:, 2 * E:].astype(jnp.bfloat16).reshape(T, H, dh), 0, 1)

    # --- causal MHA, tiled over query rows; keys truncated to the causal prefix ---
    # Never materializes (H, T, T); kv tiles beyond the causal frontier are skipped.
    n_q = T // q_tile
    ctx_tiles = []
    for qi in range(n_q):
        q0 = qi * q_tile
        kv_end = q0 + q_tile                               # static prefix length
        qt = q[:, q0:kv_end, :]                            # (H, TQ, dh)
        kt = k[:, :kv_end, :]                              # (H, KV, dh)
        vt = v[:, :kv_end, :]
        s = jnp.einsum('hqd,hkd->hqk', qt, kt,
                       preferred_element_type=jnp.float32)            # (H, TQ, KV) f32
        row = jax.lax.broadcasted_iota(jnp.int32, (q_tile, kv_end), 0) + q0
        col = jax.lax.broadcasted_iota(jnp.int32, (q_tile, kv_end), 1)
        s = jnp.where((col <= row)[None, :, :], s, -jnp.inf)
        s = s - jnp.max(s, axis=-1, keepdims=True)
        p = jnp.exp(s)
        inv = 1.0 / jnp.sum(p, axis=-1, keepdims=True)     # exact recip of a tiny tensor
        p = (p * inv).astype(jnp.bfloat16)
        c = jnp.einsum('hqk,hkd->hqd', p, vt,
                       preferred_element_type=jnp.float32).astype(jnp.bfloat16)
        ctx_tiles.append(jnp.swapaxes(c, 0, 1))            # (TQ, H, dh), bf16 relayout
    ctx = ctx_tiles[0] if n_q == 1 else jnp.concatenate(ctx_tiles, axis=0)
    attn = jnp.dot(ctx.reshape(T, E), wo_ref[...],
                   preferred_element_type=jnp.float32)     # (T, E) f32
    x1 = x + attn                                          # residual 1

    # --- LayerNorm 2 + MLP: Linear -> GELU (exact erf, matches torch GELU()) -> Linear
    # TODO(synk): Dropout1d / attention dropout are treated as eval-mode identity.
    z2 = _layernorm_f32(x1, ln2w_ref[...].astype(jnp.float32)).astype(jnp.bfloat16)
    h1 = jnp.dot(z2, w1_ref[...], preferred_element_type=jnp.float32)        # (T, 4E)
    g = 0.5 * h1 * (1.0 + jax.lax.erf(h1 * (1.0 / math.sqrt(2.0))))
    h2 = jnp.dot(g.astype(jnp.bfloat16), w2_ref[...],
                 preferred_element_type=jnp.float32)                          # (T, E)
    o_ref[0] = (x1 + h2).astype(o_ref.dtype)               # residual 2


# ---------------------------------------------------------------------------
# Final LayerNorm kernel (hoisted out of the vocab loop; runs once per token tile).
# ---------------------------------------------------------------------------
def final_layernorm_kernel(x_ref, lnw_ref, o_ref):
    x = x_ref[...].astype(jnp.float32)
    o_ref[...] = _layernorm_f32(x, lnw_ref[...].astype(jnp.float32)).astype(o_ref.dtype)


# ---------------------------------------------------------------------------
# Output head kernel: pure MXU matmul (tied projection), lane-dense vocab-tile stores.
#   z_ref: (TM, E) bf16 ; wout_ref: (E, TV) bf16 ; o_ref: (TM, TV) f32.
# ---------------------------------------------------------------------------
def output_head_kernel(z_ref, wout_ref, o_ref):
    o_ref[...] = jnp.dot(z_ref[...], wout_ref[...],
                         preferred_element_type=jnp.float32).astype(o_ref.dtype)


# ---------------------------------------------------------------------------
# Wrappers
# ---------------------------------------------------------------------------
def run_block(x, ln1w, wqkv_t, wo_t, ln2w, w1_t, w2_t, *, num_heads):
    B, T, E = x.shape
    q_tile = _pick_q_tile(T)
    assert T % q_tile == 0

    return pl.pallas_call(
        functools.partial(transformer_block_kernel,
                          num_heads=num_heads, q_tile=q_tile),
        out_shape=jax.ShapeDtypeStruct((B, T, E), x.dtype),
        grid=(B,),
        in_specs=[pl.BlockSpec((1, T, E), lambda b: (b, 0, 0)),
                  _const_weight_spec(ln1w.shape),
                  _const_weight_spec(wqkv_t.shape),
                  _const_weight_spec(wo_t.shape),
                  _const_weight_spec(ln2w.shape),
                  _const_weight_spec(w1_t.shape),
                  _const_weight_spec(w2_t.shape)],
        out_specs=pl.BlockSpec((1, T, E), lambda b: (b, 0, 0)),
        compiler_params=pltpu.CompilerParams(
            dimension_semantics=("parallel",),
            vmem_limit_bytes=_vmem_limit_bytes()),
    )(x, ln1w, wqkv_t, wo_t, ln2w, w1_t, w2_t)
    # TODO(synk): for very long T / larger E on v7x, promote the query-tile loop to a
    # "parallel" grid axis (flash-style, with an "arbitrary" kv axis) and tile the MLP
    # weights so a single layer's weights need not be fully resident in 64 MiB VMEM.


def run_final_layernorm(x2d, lnw):
    N, E = x2d.shape
    tm = _pick_token_tile(N)
    assert N % tm == 0
    return pl.pallas_call(
        final_layernorm_kernel,
        out_shape=jax.ShapeDtypeStruct((N, E), jnp.bfloat16),
        grid=(N // tm,),
        in_specs=[pl.BlockSpec((tm, E), lambda m: (m, 0)),
                  _const_weight_spec(lnw.shape)],
        out_specs=pl.BlockSpec((tm, E), lambda m: (m, 0)),
        compiler_params=pltpu.CompilerParams(
            dimension_semantics=("parallel",),
            vmem_limit_bytes=_vmem_limit_bytes()),
    )(x2d, lnw)


def run_output_head(z2d, wout_t):
    N, E = z2d.shape
    V = wout_t.shape[1]
    tv = _pick_vocab_tile(V)
    tm = _pick_token_tile(N)
    assert V % tv == 0 and N % tm == 0
    return pl.pallas_call(
        output_head_kernel,
        out_shape=jax.ShapeDtypeStruct((N, V), jnp.float32),
        # Vocab axis OUTER, token axis inner: each (E, tv) weight tile is DMA'd once
        # (index constant across the inner axis); the small activations stream instead.
        grid=(V // tv, N // tm),
        in_specs=[pl.BlockSpec((tm, E), lambda vi, mi: (mi, 0)),
                  pl.BlockSpec((E, tv), lambda vi, mi: (0, vi))],
        out_specs=pl.BlockSpec((tm, tv), lambda vi, mi: (mi, vi)),
        compiler_params=pltpu.CompilerParams(
            dimension_semantics=("parallel", "parallel"),
            vmem_limit_bytes=_vmem_limit_bytes()),
    )(z2d, wout_t)
    # TODO(synk): if a loss / softmax is consumed downstream, emit bf16 logits or fuse
    # log-softmax / cross-entropy here instead of writing (N, V) f32 back to HBM.


def gpt_forward(tokens, params):
    """tokens: (B, T) int32.  Returns (logits (B, T, V) f32, loss=None)."""
    wtok = params["wtok"]                       # (V, E) bf16, tied with the output head
    wpos = params["wpos"]                       # (block_size, E) bf16
    B, T = tokens.shape
    V, E = wtok.shape

    # Embedding gathers are glue (plain JAX); the matmul/attention hot path is Pallas.
    tok_out = jnp.take(wtok, tokens, axis=0)    # (B, T, E) bf16
    z = (tok_out + wpos[:T][None]).astype(jnp.bfloat16)

    for layer in params["layers"]:
        z = run_block(z, layer["ln1w"], layer["wqkv_t"], layer["wo_t"],
                      layer["ln2w"], layer["w1_t"], layer["w2_t"],
                      num_heads=params["num_heads"])

    # Final LN once per token (hoisted out of the vocab loop), then the tied projection
    # against the weight that was pre-transposed once at init (no per-call transpose).
    z2d = z.reshape(B * T, E)
    zn = run_final_layernorm(z2d, params["out_lnw"])
    logits = run_output_head(zn, params["wout_t"]).reshape(B, T, V)
    # TODO(synk): CrossEntropyLoss path (y is not None) not implemented; returns None.
    return logits, None


# ---------------------------------------------------------------------------
# Deterministic parameter init (normal std=0.02 for embeddings/linears, LN weights = 1).
# Projection weights are stored bf16, pre-transposed as (in_features, out_features);
# the tied output weight is stored pre-transposed once; the attention scale is folded
# into the q-projection columns.
# ---------------------------------------------------------------------------
def init_params(key, vocab, emb, block_size, num_heads, num_layers):
    hid = 4 * emb
    keys = jax.random.split(key, 2 + 4 * num_layers)

    def normal(k, shape):
        return 0.02 * jax.random.normal(k, shape, jnp.float32)

    wtok_f32 = normal(keys[0], (vocab, emb))
    params = {
        "num_heads": num_heads,
        "wtok": wtok_f32.astype(jnp.bfloat16),                    # (V, E) gather table
        "wout_t": jnp.transpose(wtok_f32).astype(jnp.bfloat16),   # (E, V) tied head
        "wpos": normal(keys[1], (block_size, emb)).astype(jnp.bfloat16),
        "out_lnw": jnp.ones((1, emb), jnp.float32),
        "layers": [],
    }
    scale = 1.0 / math.sqrt(emb // num_heads)
    for l in range(num_layers):
        k0, k1, k2, k3 = keys[2 + 4 * l: 6 + 4 * l]
        wqkv = normal(k0, (emb, 3 * emb))
        # Fold the 1/sqrt(dh) attention scale into the q-projection columns (one-time).
        wqkv = wqkv.at[:, :emb].multiply(scale)
        params["layers"].append({
            "ln1w":   jnp.ones((1, emb), jnp.float32),
            "wqkv_t": wqkv.astype(jnp.bfloat16),
            "wo_t":   normal(k1, (emb, emb)).astype(jnp.bfloat16),
            "ln2w":   jnp.ones((1, emb), jnp.float32),
            "w1_t":   normal(k2, (emb, hid)).astype(jnp.bfloat16),
            "w2_t":   normal(k3, (hid, emb)).astype(jnp.bfloat16),
        })
    return params


if __name__ == "__main__":
    VOCAB, EMB, BLOCK, HEADS, LAYERS = 64, 32, 8, 4, 2
    B, T = 2, 8

    key = jax.random.PRNGKey(0)
    k_param, k_tok = jax.random.split(key)
    params = init_params(k_param, VOCAB, EMB, BLOCK, HEADS, LAYERS)
    tokens = jax.random.randint(k_tok, (B, T), 0, VOCAB, dtype=jnp.int32)

    logits, loss = gpt_forward(tokens, params)
    jax.block_until_ready(logits)
    assert logits.shape == (B, T, VOCAB)
    assert logits.dtype == jnp.float32
    assert loss is None
    assert bool(jnp.all(jnp.isfinite(logits)))
    print("KERNEL_OK")
</pallas_src>

<mosaic_0001>
module attributes {stable_mosaic.version = 11 : i64} {
  func.func @_probe_kernel(%arg0: i32, %arg1: memref<8x128xf32, #tpu.memory_space<vmem>>, %arg2: memref<8x128xf32, #tpu.memory_space<vmem>>) attributes {dimension_semantics = [#tpu.dimension_semantics<arbitrary>], iteration_bounds = array<i64: 2>, scalar_prefetch = 0 : i64, scratch_operands = 0 : i64, tpu.core_type = #tpu.core_type<tc>, window_params = [{pipeline_mode = #tpu.pipeline_mode<synchronous>, transform_indices = @transform_0, window_bounds = array<i64: 8, 128>}, {transform_indices = @transform_1, window_bounds = array<i64: 8, 128>}]} {
    %c0 = arith.constant 0 : index
    %c0_0 = arith.constant 0 : index
    %0 = vector.load %arg1[%c0, %c0_0] : memref<8x128xf32, #tpu.memory_space<vmem>>, vector<8x128xf32>
    %cst = arith.constant 2.000000e+00 : f32
    %1 = vector.broadcast %cst : f32 to vector<8x128xf32>
    %2 = arith.mulf %0, %1 : vector<8x128xf32>
    %c0_1 = arith.constant 0 : index
    %c0_2 = arith.constant 0 : index
    %3 = vector.load %arg2[%c0_1, %c0_2] : memref<8x128xf32, #tpu.memory_space<vmem>>, vector<8x128xf32>
    tpu.vector_store %arg2[%c0_1, %c0_2], %2 {strides = array<i32>} : memref<8x128xf32, #tpu.memory_space<vmem>>, vector<8x128xf32>,
    return
  }
  func.func @transform_0(%arg0: i32) -> (i32, i32) {
    %c0_i32 = arith.constant 0 : i32
    %c0_i32_0 = arith.constant 0 : i32
    %c0_i32_1 = arith.constant 0 : i32
    return %c0_i32, %c0_i32_0 : i32, i32
  }
  func.func @transform_1(%arg0: i32) -> (i32, i32) {
    %c0_i32 = arith.constant 0 : i32
    %c0_i32_0 = arith.constant 0 : i32
    return %arg0, %c0_i32 : i32, i32
  }
}

module attributes {stable_mosaic.version = 11 : i64} {
  func.func @transformer_block_kernel(%arg0: i32, %arg1: memref<1x8x32xbf16, #tpu.memory_space<vmem>>, %arg2: memref<1x32xf32, #tpu.memory_space<vmem>>, %arg3: memref<32x96xbf16, #tpu.memory_space<vmem>>, %arg4: memref<32x32xbf16, #tpu.memory_space<vmem>>, %arg5: memref<1x32xf32, #tpu.memory_space<vmem>>, %arg6: memref<32x128xbf16, #tpu.memory_space<vmem>>, %arg7: memref<128x32xbf16, #tpu.memory_space<vmem>>, %arg8: memref<1x8x32xbf16, #tpu.memory_space<vmem>>) attributes {dimension_semantics = [#tpu.dimension_semantics<parallel>], iteration_bounds = array<i64: 2>, scalar_prefetch = 0 : i64, scratch_operands = 0 : i64, tpu.core_type = #tpu.core_type<tc>, window_params = [{transform_indices = @transform_0, window_bounds = array<i64: 1, 8, 32>}, {pipeline_mode = #tpu.pipeline_mode<synchronous>, transform_indices = @transform_1, window_bounds = array<i64: 1, 32>}, {pipeline_mode = #tpu.pipeline_mode<synchronous>, transform_indices = @transform_2, window_bounds = array<i64: 32, 96>}, {pipeline_mode = #tpu.pipeline_mode<synchronous>, transform_indices = @transform_3, window_bounds = array<i64: 32, 32>}, {pipeline_mode = #tpu.pipeline_mode<synchronous>, transform_indices = @transform_4, window_bounds = array<i64: 1, 32>}, {pipeline_mode = #tpu.pipeline_mode<synchronous>, transform_indices = @transform_5, window_bounds = array<i64: 32, 128>}, {pipeline_mode = #tpu.pipeline_mode<synchronous>, transform_indices = @transform_6, window_bounds = array<i64: 128, 32>}, {transform_indices = @transform_7, window_bounds = array<i64: 1, 8, 32>}]} {
    %c0 = arith.constant 0 : index
    %c0_0 = arith.constant 0 : index
    %c0_1 = arith.constant 0 : index
    %0 = vector.load %arg1[%c0, %c0_0, %c0_1] : memref<1x8x32xbf16, #tpu.memory_space<vmem>>, vector<1x8x32xbf16>
    %1 = vector.shape_cast %0 : vector<1x8x32xbf16> to vector<8x32xbf16>
    %2 = arith.extf %1 : vector<8x32xbf16> to vector<8x32xf32>
    %c0_2 = arith.constant 0 : index
    %c0_3 = arith.constant 0 : index
    %3 = vector.load %arg2[%c0_2, %c0_3] : memref<1x32xf32, #tpu.memory_space<vmem>>, vector<1x32xf32>
    %cst = arith.constant dense<0.000000e+00> : vector<8xf32>
    %4 = vector.multi_reduction <add>, %2, %cst [1] : vector<8x32xf32> to vector<8xf32>
    %5 = vector.shape_cast %4 : vector<8xf32> to vector<8x1xf32>
    %cst_4 = arith.constant 3.200000e+01 : f32
    %6 = vector.broadcast %cst_4 : f32 to vector<8x1xf32>
    %7 = arith.divf %5, %6 : vector<8x1xf32>
    %8 = vector.broadcast %7 : vector<8x1xf32> to vector<8x32xf32>
    %9 = arith.subf %2, %8 : vector<8x32xf32>
    %10 = arith.mulf %9, %9 : vector<8x32xf32>
    %cst_5 = arith.constant dense<0.000000e+00> : vector<8xf32>
    %11 = vector.multi_reduction <add>, %10, %cst_5 [1] : vector<8x32xf32> to vector<8xf32>
    %12 = vector.shape_cast %11 : vector<8xf32> to vector<8x1xf32>
    %cst_6 = arith.constant 3.200000e+01 : f32
    %13 = vector.broadcast %cst_6 : f32 to vector<8x1xf32>
    %14 = arith.divf %12, %13 : vector<8x1xf32>
    %cst_7 = arith.constant 9.99999974E-6 : f32
    %15 = vector.broadcast %cst_7 : f32 to vector<8x1xf32>
    %16 = arith.addf %14, %15 : vector<8x1xf32>
    %17 = math.rsqrt %16 : vector<8x1xf32>
    %18 = vector.broadcast %17 : vector<8x1xf32> to vector<8x32xf32>
    %19 = arith.mulf %9, %18 : vector<8x32xf32>
    %20 = vector.broadcast %3 : vector<1x32xf32> to vector<8x32xf32>
    %21 = arith.mulf %19, %20 : vector<8x32xf32>
    %22 = arith.truncf %21 : vector<8x32xf32> to vector<8x32xbf16>
    %c0_8 = arith.constant 0 : index
    %c0_9 = arith.constant 0 : index
    %23 = vector.load %arg3[%c0_8, %c0_9] : memref<32x96xbf16, #tpu.memory_space<vmem>>, vector<32x96xbf16>
    %cst_10 = arith.constant dense<0.000000e+00> : vector<8x96xf32>
    %24 = tpu.matmul %22, %23, %cst_10 {dimension_numbers = #tpu.dot_dimension_numbers<[1], [0], [0], [1], [0, 0, 1, 1], [], []>} : vector<8x32xbf16>, vector<32x96xbf16>, vector<8x96xf32> -> vector<8x96xf32>
    %25 = vector.extract_strided_slice %24 {offsets = [0, 0], sizes = [8, 32], strides = [1, 1]} : vector<8x96xf32> to vector<8x32xf32>
    %26 = arith.truncf %25 : vector<8x32xf32> to vector<8x32xbf16>
    %27 = vector.shape_cast %26 : vector<8x32xbf16> to vector<8x4x8xbf16>
    %28 = tpu.transpose %27, [1, 0, 2] : vector<8x4x8xbf16> -> vector<4x8x8xbf16>
    %29 = vector.extract_strided_slice %24 {offsets = [0, 32], sizes = [8, 32], strides = [1, 1]} : vector<8x96xf32> to vector<8x32xf32>
    %30 = arith.truncf %29 : vector<8x32xf32> to vector<8x32xbf16>
    %31 = vector.shape_cast %30 : vector<8x32xbf16> to vector<8x4x8xbf16>
    %32 = tpu.transpose %31, [1, 0, 2] : vector<8x4x8xbf16> -> vector<4x8x8xbf16>
    %33 = vector.extract_strided_slice %24 {offsets = [0, 64], sizes = [8, 32], strides = [1, 1]} : vector<8x96xf32> to vector<8x32xf32>
    %34 = arith.truncf %33 : vector<8x32xf32> to vector<8x32xbf16>
    %35 = vector.shape_cast %34 : vector<8x32xbf16> to vector<8x4x8xbf16>
    %36 = tpu.transpose %35, [1, 0, 2] : vector<8x4x8xbf16> -> vector<4x8x8xbf16>
    "tpu.trace_start"() <{level = 10 : i32, message = "hqd,hkd->hqk"}> : () -> ()
    %cst_11 = arith.constant dense<0.000000e+00> : vector<4x8x8xf32>
    %37 = tpu.matmul %28, %32, %cst_11 {dimension_numbers = #tpu.dot_dimension_numbers<[2], [2], [1], [1], [0, 0, 0, 1, 1, 1], [0], [0]>} : vector<4x8x8xbf16>, vector<4x8x8xbf16>, vector<4x8x8xf32> -> vector<4x8x8xf32>
    "tpu.trace_stop"() : () -> ()
    %38 = tpu.iota {dimensions = array<i32: 0>} : vector<8x8xi32>
    %c0_i32 = arith.constant 0 : i32
    %39 = vector.broadcast %c0_i32 : i32 to vector<8x8xi32>
    %40 = arith.addi %38, %39 : vector<8x8xi32>
    %41 = tpu.iota {dimensions = array<i32: 1>} : vector<8x8xi32>
    %42 = arith.cmpi sle, %41, %40 : vector<8x8xi32>
    %43 = vector.shape_cast %42 : vector<8x8xi1> to vector<1x8x8xi1>
    %cst_12 = arith.constant 0xFF800000 : f32
    %44 = vector.shape_cast %43 : vector<1x8x8xi1> to vector<1x8x8xi1>
    %45 = vector.broadcast %44 : vector<1x8x8xi1> to vector<4x8x8xi1>
    %46 = vector.broadcast %cst_12 : f32 to vector<4x8x8xf32>
    %47 = arith.select %45, %37, %46 : vector<4x8x8xi1>, vector<4x8x8xf32>
    %cst_13 = arith.constant dense<0xFF800000> : vector<4x8xf32>
    %48 = vector.multi_reduction <maximumf>, %47, %cst_13 [2] : vector<4x8x8xf32> to vector<4x8xf32>
    %49 = vector.shape_cast %48 : vector<4x8xf32> to vector<4x8x1xf32>
    %50 = vector.broadcast %49 : vector<4x8x1xf32> to vector<4x8x8xf32>
    %51 = arith.subf %47, %50 : vector<4x8x8xf32>
    %52 = math.exp %51 : vector<4x8x8xf32>
    %cst_14 = arith.constant dense<0.000000e+00> : vector<4x8xf32>
    %53 = vector.multi_reduction <add>, %52, %cst_14 [2] : vector<4x8x8xf32> to vector<4x8xf32>
    %54 = vector.shape_cast %53 : vector<4x8xf32> to vector<4x8x1xf32>
    %cst_15 = arith.constant 1.000000e+00 : f32
    %55 = vector.broadcast %cst_15 : f32 to vector<4x8x1xf32>
    %56 = arith.divf %55, %54 : vector<4x8x1xf32>
    %57 = vector.broadcast %56 : vector<4x8x1xf32> to vector<4x8x8xf32>
    %58 = arith.mulf %52, %57 : vector<4x8x8xf32>
    %59 = arith.truncf %58 : vector<4x8x8xf32> to vector<4x8x8xbf16>
    "tpu.trace_start"() <{level = 10 : i32, message = "hqk,hkd->hqd"}> : () -> ()
    %cst_16 = arith.constant dense<0.000000e+00> : vector<4x8x8xf32>
    %60 = tpu.matmul %59, %36, %cst_16 {dimension_numbers = #tpu.dot_dimension_numbers<[2], [1], [1], [2], [0, 0, 0, 1, 1, 2], [0], [0]>} : vector<4x8x8xbf16>, vector<4x8x8xbf16>, vector<4x8x8xf32> -> vector<4x8x8xf32>
    "tpu.trace_stop"() : () -> ()
    %61 = arith.truncf %60 : vector<4x8x8xf32> to vector<4x8x8xbf16>
    %62 = tpu.transpose %61, [1, 0, 2] : vector<4x8x8xbf16> -> vector<8x4x8xbf16>
    %63 = vector.shape_cast %62 : vector<8x4x8xbf16> to vector<8x32xbf16>
    %c0_17 = arith.constant 0 : index
    %c0_18 = arith.constant 0 : index
    %64 = vector.load %arg4[%c0_17, %c0_18] : memref<32x32xbf16, #tpu.memory_space<vmem>>, vector<32x32xbf16>
    %cst_19 = arith.constant dense<0.000000e+00> : vector<8x32xf32>
    %65 = tpu.matmul %63, %64, %cst_19 {dimension_numbers = #tpu.dot_dimension_numbers<[1], [0], [0], [1], [0, 0, 1, 1], [], []>} : vector<8x32xbf16>, vector<32x32xbf16>, vector<8x32xf32> -> vector<8x32xf32>
    %66 = arith.addf %2, %65 : vector<8x32xf32>
    %c0_20 = arith.constant 0 : index
    %c0_21 = arith.constant 0 : index
    %67 = vector.load %arg5[%c0_20, %c0_21] : memref<1x32xf32, #tpu.memory_space<vmem>>, vector<1x32xf32>
    %cst_22 = arith.constant dense<0.000000e+00> : vector<8xf32>
    %68 = vector.multi_reduction <add>, %66, %cst_22 [1] : vector<8x32xf32> to vector<8xf32>
    %69 = vector.shape_cast %68 : vector<8xf32> to vector<8x1xf32>
    %cst_23 = arith.constant 3.200000e+01 : f32
    %70 = vector.broadcast %cst_23 : f32 to vector<8x1xf32>
    %71 = arith.divf %69, %70 : vector<8x1xf32>
    %72 = vector.broadcast %71 : vector<8x1xf32> to vector<8x32xf32>
    %73 = arith.subf %66, %72 : vector<8x32xf32>
    %74 = arith.mulf %73, %73 : vector<8x32xf32>
    %cst_24 = arith.constant dense<0.000000e+00> : vector<8xf32>
    %75 = vector.multi_reduction <add>, %74, %cst_24 [1] : vector<8x32xf32> to vector<8xf32>
    %76 = vector.shape_cast %75 : vector<8xf32> to vector<8x1xf32>
    %cst_25 = arith.constant 3.200000e+01 : f32
    %77 = vector.broadcast %cst_25 : f32 to vector<8x1xf32>
    %78 = arith.divf %76, %77 : vector<8x1xf32>
    %cst_26 = arith.constant 9.99999974E-6 : f32
    %79 = vector.broadcast %cst_26 : f32 to vector<8x1xf32>
    %80 = arith.addf %78, %79 : vector<8x1xf32>
    %81 = math.rsqrt %80 : vector<8x1xf32>
    %82 = vector.broadcast %81 : vector<8x1xf32> to vector<8x32xf32>
    %83 = arith.mulf %73, %82 : vector<8x32xf32>
    %84 = vector.broadcast %67 : vector<1x32xf32> to vector<8x32xf32>
    %85 = arith.mulf %83, %84 : vector<8x32xf32>
    %86 = arith.truncf %85 : vector<8x32xf32> to vector<8x32xbf16>
    %c0_27 = arith.constant 0 : index
    %c0_28 = arith.constant 0 : index
    %87 = vector.load %arg6[%c0_27, %c0_28] : memref<32x128xbf16, #tpu.memory_space<vmem>>, vector<32x128xbf16>
    %cst_29 = arith.constant dense<0.000000e+00> : vector<8x128xf32>
    %88 = tpu.matmul %86, %87, %cst_29 {dimension_numbers = #tpu.dot_dimension_numbers<[1], [0], [0], [1], [0, 0, 1, 1], [], []>} : vector<8x32xbf16>, vector<32x128xbf16>, vector<8x128xf32> -> vector<8x128xf32>
    %cst_30 = arith.constant 5.000000e-01 : f32
    %89 = vector.broadcast %cst_30 : f32 to vector<8x128xf32>
    %90 = arith.mulf %89, %88 : vector<8x128xf32>
    %cst_31 = arith.constant 0.707106769 : f32
    %91 = vector.broadcast %cst_31 : f32 to vector<8x128xf32>
    %92 = arith.mulf %88, %91 : vector<8x128xf32>
    %93 = math.erf %92 : vector<8x128xf32>
    %cst_32 = arith.constant 1.000000e+00 : f32
    %94 = vector.broadcast %cst_32 : f32 to vector<8x128xf32>
    %95 = arith.addf %94, %93 : vector<8x128xf32>
    %96 = arith.mulf %90, %95 : vector<8x128xf32>
    %97 = arith.truncf %96 : vector<8x128xf32> to vector<8x128xbf16>
    %c0_33 = arith.constant 0 : index
    %c0_34 = arith.constant 0 : index
    %98 = vector.load %arg7[%c0_33, %c0_34] : memref<128x32xbf16, #tpu.memory_space<vmem>>, vector<128x32xbf16>
    %cst_35 = arith.constant dense<0.000000e+00> : vector<8x32xf32>
    %99 = tpu.matmul %97, %98, %cst_35 {dimension_numbers = #tpu.dot_dimension_numbers<[1], [0], [0], [1], [0, 0, 1, 1], [], []>} : vector<8x128xbf16>, vector<128x32xbf16>, vector<8x32xf32> -> vector<8x32xf32>
    %100 = arith.addf %66, %99 : vector<8x32xf32>
    %101 = arith.truncf %100 : vector<8x32xf32> to vector<8x32xbf16>
    %c0_36 = arith.constant 0 : index
    %c0_37 = arith.constant 0 : index
    %c0_38 = arith.constant 0 : index
    %102 = vector.load %arg8[%c0_36, %c0_37, %c0_38] : memref<1x8x32xbf16, #tpu.memory_space<vmem>>, vector<1x8x32xbf16>
    %103 = vector.shape_cast %102 : vector<1x8x32xbf16> to vector<8x32xbf16>
    %104 = vector.shape_cast %101 : vector<8x32xbf16> to vector<1x8x32xbf16>
    tpu.vector_store %arg8[%c0_36, %c0_37, %c0_38], %104 {strides = array<i32>} : memref<1x8x32xbf16, #tpu.memory_space<vmem>>, vector<1x8x32xbf16>,
    return
  }
  func.func @transform_0(%arg0: i32) -> (i32, i32, i32) {
    %c0_i32 = arith.constant 0 : i32
    %c0_i32_0 = arith.constant 0 : i32
    %c0_i32_1 = arith.constant 0 : i32
    return %arg0, %c0_i32, %c0_i32_0 : i32, i32, i32
  }
  func.func @transform_1(%arg0: i32) -> (i32, i32) {
    %c0_i32 = arith.constant 0 : i32
    %c0_i32_0 = arith.constant 0 : i32
    %c0_i32_1 = arith.constant 0 : i32
    return %c0_i32, %c0_i32_0 : i32, i32
  }
  func.func @transform_2(%arg0: i32) -> (i32, i32) {
    %c0_i32 = arith.constant 0 : i32
    %c0_i32_0 = arith.constant 0 : i32
    %c0_i32_1 = arith.constant 0 : i32
    return %c0_i32, %c0_i32_0 : i32, i32
  }
  func.func @transform_3(%arg0: i32) -> (i32, i32) {
    %c0_i32 = arith.constant 0 : i32
    %c0_i32_0 = arith.constant 0 : i32
    %c0_i32_1 = arith.constant 0 : i32
    return %c0_i32, %c0_i32_0 : i32, i32
  }
  func.func @transform_4(%arg0: i32) -> (i32, i32) {
    %c0_i32 = arith.constant 0 : i32
    %c0_i32_0 = arith.constant 0 : i32
    %c0_i32_1 = arith.constant 0 : i32
    return %c0_i32, %c0_i32_0 : i32, i32
  }
  func.func @transform_5(%arg0: i32) -> (i32, i32) {
    %c0_i32 = arith.constant 0 : i32
    %c0_i32_0 = arith.constant 0 : i32
    %c0_i32_1 = arith.constant 0 : i32
    return %c0_i32, %c0_i32_0 : i32, i32
  }
  func.func @transform_6(%arg0: i32) -> (i32, i32) {
    %c0_i32 = arith.constant 0 : i32
    %c0_i32_0 = arith.constant 0 : i32
    %c0_i32_1 = arith.constant 0 : i32
    return %c0_i32, %c0_i32_0 : i32, i32
  }
  func.func @transform_7(%arg0: i32) -> (i32, i32, i32) {
    %c0_i32 = arith.constant 0 : i32
    %c0_i32_0 = arith.constant 0 : i32
    %c0_i32_1 = arith.constant 0 : i32
    return %arg0, %c0_i32, %c0_i32_0 : i32, i32, i32
  }
}

</mosaic_0001>

<bundles_post_ra>
// kernel: tpu_custom_call.1
= control target key start
LH: loop header
LB: loop body
LE: loop exit
PB: predicated region body
PF: predicated region fallthrough
CT: control target
= control target key end

     0   :  { %6 = vsyncpa [#allocation3], 0  ;;  %s482_s0 = inlined_call_operand.hbm [shape: f32[8,128], index: 0, kind: input, shape index: {}]   ;;  %s483_s1 = inlined_call_operand.hbm [shape: f32[16,128], index: 1, kind: output, shape index: {}]  }
   0x1   :  { %7 = vsyncpa [#allocation4], 0 }
   0x2   :  { %9 = vsyncpa [#allocation4 + $0x1], 0  ;;  %s352_s6 = smov 0   ;;  %s354_s7 = smov 0  }
   0x3   :  { %s356_s8 = smov 0   ;;  %s358_s9 = smov 0  }
   0x4 LB: > { %s373_s10 = sadd.s32 4294967295, %s338_s9   ;;  %s184_s11 = sadd.s32 4294967294, %s338_s9   ;;  %s338_s9 = sphi %s358_s9, %s499_s9   ;;  %s334_s8 = sphi %s356_s8, %s498_s8   ;;  %s330_s7 = sphi %s354_s7, %s497_s7   ;;  %s326_s6 = sphi %s352_s6, %s496_s6  }
   0x5   : > { %s377_s12 = sadd.s32 1, %s338_s9   ;;  %s43_s13 = sadd.s32 1, %s334_s8 }
   0x6   : > { %s40_s14 = ssub.s32 %s338_s9, %s377_s12  ;;  %p53_p0 = scmp.ne.s32.totalorder %s334_s8, %s330_s7 }
   0x7   : > { %p41_p1 = scmp.eq.s32.totalorder %s40_s14, 0  ;;  %p54_p2 = scmp.eq.s32.totalorder %s373_s10, 1 }
   0x8   : > { %p59_p3 = scmp.ne.s32.totalorder %s330_s7, %s326_s6  ;;  %p60_p4 = scmp.eq.s32.totalorder %s184_s11, 1 }
   0x9   : > { %s388_s15 = scalar_select %p41_p1, %s334_s8, %s43_s13  }
   0xa   : > { %p390_p5 = por %p54_p2, %p53_p0  ;;  %p394_p6 = por %p60_p4, %p59_p3 }
   0xb   : > { %p185_p7 = scmp.ge.s32.totalorder %s338_s9, 1  ;;  %p67_p8 = scmp.lt.s32.totalorder %s338_s9, 3 }
   0xc   : > { %s487_s16 = scalar_select %p390_p5, 1, 0 }
   0xd   : > { %s488_s17 = scalar_select %p394_p6, 1, 0 }
   0xe   : > { %p484_p9 = scmp.eq.s32.totalorder %s373_s10, 0  ;;  %p401_p10 = pnand %p185_p7, %p67_p8 }
   0xf   : > { %s340_s19 = smov [#allocation2]   ;;  %s244_s24 = scalar_lea.hbm %s482_s0, 128 }
  0x10   : > { %s489_s18 = scalar_select %p401_p10, 1, 0 }
  0x11   : > { %s80_s20 = sshll.u32 %s340_s19, 4  ;;  %p200_p11 = pneg %p401_p10  ;;  %s81_s20 = int_to_ptr.vmem [resolvable:$true] %s80_s20 }
  0x12   : > { %p245_p13 = scmp.ne.s32.totalorder %s482_s0, %s244_s24  ;;  %p251_p3 = scmp.lt.u32.totalorder %s244_s24, %s482_s0 }
  0x13   : > { %p409_p12 = pnand %p484_p9, %p200_p11 }
  0x15   : > { %p246_p0 = pneg %p409_p12 }
  0x17   : > { %p247_p1 = pnand %p246_p0, %p245_p13 }
  0x19   : > { %p248_p2 = pneg %p247_p1 }
  0x1b   : > { %p253_p4 = pnand %p251_p3, %p248_p2 }
  0x1d   : > { %256 = shalt.err (!%p253_p4)
}
  0x1e   : > { %s257_s29 = scalar_lea.vmem %s81_s20, 128  ;;  %p265_p9 = scmp.lt.s32.totalorder %s81_s20, %s81_s20 }
  0x1f   : > { %p258_p7 = scmp.ne.s32.totalorder %s81_s20, %s257_s29  ;;  %p266_p6 = scmp.lt.s32.totalorder %s257_s29, %s257_s29 }
  0x21   : > { %p260_p8 = pnand %p258_p7, %p246_p0  ;;  %p267_p5 = por %p266_p6, %p265_p9 }
  0x23   : > { %p261_p11 = pneg %p260_p8 }
  0x25   : > { %p268_p10 = pnand %p267_p5, %p261_p11 }
  0x27   : > { %271 = shalt.err (!%p268_p10)
}
  0x28   : > { %203 = dma.hbm_to_vmem [thread:$0]  (!%p409_p12), %s482_s0, 128, %s81_s20, [#allocation3]  }
  0x29   : > { %p491_p13 = scmp.ne.s32.totalorder %s489_s18, 0 }
  0x2a   : > { %p492_p1 = scmp.eq.s32.totalorder (!%p491_p13), %s373_s10, 0 }
  0x2b   : > { %93 = sbr.rel (%p491_p13) target bundleno = 77 (0x4d), region = 24 }
  0x32   : > { %317 = dma.done.wait (%p492_p1), [#allocation3], 128   ;;  %p493_p0 = pmov %p492_p1 }
  0x33   : > { %s105_s3 = sand.u32 1, %s330_s7   ;;  %s191_s13 = sshll.u32 %s373_s10, 7  ;;  %v108_v0 = vld [vmem:[#allocation2] sm:$0xff] }
  0x34   : > { %319 = vsyncadd (%p493_p0), [#allocation3], 4294967168  ;;  %s189_s4 = sshll.u32 %s105_s3, 3  ;;  %v109_v1 = vmul.f32 2.0, %v108_v0  ;;  %s442_s19 = scalar_lea.hbm %s483_s1, %s191_s13 }
  0x35   : > { %s107_s5 = scalar_lea.vmem [#allocation5], %s189_s4  ;;  %s112_s20 = scalar_lea.sflag [#allocation4], %s105_s3 }
  0x36   : > { %s125_s11 = sshll.u32 %s107_s5, 4  ;;  %110 = vst [vmem:[%s107_s5] sm:$0xff] %v109_v1  ;;  %p494_p6 = scmp.ne.s32.totalorder %s487_s16, 0  ;;  %s437_s11 = int_to_ptr.vmem [resolvable:$true] %s125_s11 }
  0x37   : > { %s272_s21 = scalar_lea.vmem %s437_s11, 128  ;;  %s341_s10 = smov [#allocation5]  }
  0x38   : > { %p273_p5 = scmp.ne.s32.totalorder %s437_s11, %s272_s21  ;;  %s276_s22 = sshll.u32 %s341_s10, 4  ;;  %s277_s22 = int_to_ptr.vmem [resolvable:$false] %s276_s22 }
  0x39   : > { %s278_s23 = scalar_lea.vmem %s277_s22, 256  ;;  %p279_p12 = scmp.lt.s32.totalorder %s437_s11, %s277_s22 }
  0x3a   : > { %p274_p9 = pnand %p273_p5, %p494_p6  ;;  %p280_p2 = scmp.lt.s32.totalorder %s278_s23, %s272_s21 }
  0x3c   : > { %p275_p10 = pneg %p274_p9  ;;  %p281_p3 = por %p280_p2, %p279_p12 }
  0x3e   : > { %p282_p4 = pnand %p281_p3, %p275_p10 }
  0x40   : > { %285 = shalt.err (!%p282_p4)
}
  0x41   : > { %s286_s24 = scalar_lea.hbm %s442_s19, 128  ;;  %s290_s27 = scalar_lea.hbm %s483_s1, 256 }
  0x42   : > { %p287_p7 = scmp.ne.s32.totalorder %s442_s19, %s286_s24  ;;  %p291_p13 = scmp.lt.u32.totalorder %s442_s19, %s483_s1 }
  0x43   : > { %p292_p1 = scmp.lt.u32.totalorder %s290_s27, %s286_s24  ;;  %p294_p5 = scmp.lt.u32.totalorder %s286_s24, %s442_s19 }
  0x44   : > { %p288_p8 = pnand %p287_p7, %p494_p6 }
  0x45   : > { %p293_p0 = por %p292_p1, %p291_p13 }
  0x46   : > { %p289_p11 = pneg %p288_p8 }
  0x47   : > { %p295_p9 = por %p294_p5, %p293_p0 }
  0x49   : > { %p296_p10 = pnand %p295_p9, %p289_p11 }
  0x4b   : > { %299 = shalt.err (!%p296_p10)
}
  0x4c   : > { %198 = dma.vmem_to_hbm [thread:$0]  (%p494_p6), %s437_s11, 128, %s442_s19, %s112_s20  }
  0x4d PF: > { %p210_p12 = scmp.ge.s32.totalorder %s338_s9, 2  ;;  %s137_s30 = sand.u32 1, %s326_s6  }
  0x4e   : > { %p495_p2 = scmp.ne.s32.totalorder %s488_s17, 0  ;;  %s138_s2 = scalar_lea.sflag [#allocation4], %s137_s30 }
  0x50   : > { %p205_p3 = pnand %p210_p12, %p495_p2 }
  0x52   : > { %321 = dma.done.wait (!%p205_p3), %s138_s2, 128  }
  0x53   : > { %323 = vsyncadd (!%p205_p3), %s138_s2, 4294967168  ;;  %p12_p4 = scmp.ge.s32.totalorder %s377_s12, 4   ;;  %s496_s6 = smov %s330_s7 }
  0x54   : > { %s497_s7 = smov %s334_s8  ;;  %s498_s8 = smov %s388_s15 }
  0x55   : > { %s499_s9 = smov %s377_s12  ;;  %14 = sbr.rel (!%p12_p4) target bundleno = 4 (0x4), region = 61 }
  0x5c   :  { %143 = vsyncpa [#allocation3], 1 }
  0x5d   :  { %145 = vsyncpa [#allocation3 + $0x1], 1 }
  0x5e   :  { %146 = vsyncpa [#allocation4], 1 }
  0x5f   :  { %148 = vsyncpa [#allocation4 + $0x1], 1 }

// kernel: tpu_custom_call.1
= control target key start
LH: loop header
LB: loop body
LE: loop exit
PB: predicated region body
PF: predicated region fallthrough
CT: control target
= control target key end

     0   :  { %12 = vsyncpa [#allocation3], 0  ;;  %s3236_s0 = inlined_call_operand.hbm [shape: bf16[2,8,32], index: 0, kind: input, shape index: {}]   ;;  %s3237_s1 = inlined_call_operand.hbm [shape: f32[1,32], index: 1, kind: input, shape index: {}]   ;;  %s3238_s2 = inlined_call_operand.hbm [shape: bf16[32,96], index: 2, kind: input, shape index: {}]   ;;  %s3239_s3 = inlined_call_operand.hbm [shape: bf16[32,32], index: 3, kind: input, shape index: {}]   ;;  %s3240_s4 = inlined_call_operand.hbm [shape: f32[1,32], index: 4, kind: input, shape index: {}]   ;;  %s3241_s5 = inlined_call_operand.hbm [shape: bf16[32,128], index: 5, kind: input, shape index: {}]   ;;  %s3242_s6 = inlined_call_operand.hbm [shape: bf16[128,32], index: 6, kind: input, shape index: {}]   ;;  %s3243_s7 = inlined_call_operand.hbm [shape: bf16[2,8,32], index: 7, kind: output, shape index: {}]  }
   0x1   :  { %14 = vsyncpa [#allocation3 + $0x1], 0 }
   0x2   :  { %15 = vsyncpa [#allocation6], 0 }
   0x3   :  { %16 = vsyncpa [#allocation9], 0 }
   0x4   :  { %17 = vsyncpa [#allocation12], 0 }
   0x5   :  { %18 = vsyncpa [#allocation4], 0 }
   0x6   :  { %20 = vsyncpa [#allocation4 + $0x1], 0  ;;  %s2653_s24 = smov 0   ;;  %s2655_s25 = smov 0  }
   0x7   :  { %s2657_s26 = smov 0   ;;  %s2659_s27 = smov 0  }
   0x8 LB: > { %s2590_s28 = smov [#allocation5]   ;;  %s2674_s30 = sadd.s32 4294967295, %s2588_s27   ;;  %s2588_s27 = sphi %s2659_s27, %s3269_s27   ;;  %s2584_s26 = sphi %s2657_s26, %s3268_s26   ;;  %s2580_s25 = sphi %s2655_s25, %s3267_s25   ;;  %s2576_s24 = sphi %s2653_s24, %s3266_s24  }
   0x9   : > { %s222_s29 = sshll.u32 %s2590_s28, 4  ;;  %p1978_p0 = scmp.ge.s32.totalorder %s2588_s27, 1  ;;  %s2679_s29 = int_to_ptr.vmem [resolvable:$true] %s222_s29 }
   0xa   : > { %p3244_p1 = scmp.eq.s32.totalorder %s2674_s30, 0  ;;  %p209_p2 = scmp.lt.s32.totalorder %s2588_s27, 3 }
   0xb   : > { %s2591_s9 = smov [#allocation8]   ;;  %s2592_s12 = smov [#allocation11]  }
   0xc   : > { %p2681_p3 = pnand %p1978_p0, %p209_p2  ;;  %s245_s10 = sshll.u32 %s2591_s9, 4  ;;  %s2694_s10 = int_to_ptr.vmem [resolvable:$true] %s245_s10 }
   0xd   : > { %s269_s13 = sshll.u32 %s2592_s12, 4  ;;  %s2312_s16 = scalar_lea.hbm %s3237_s1, 16  ;;  %s2696_s13 = int_to_ptr.vmem [resolvable:$true] %s269_s13 }
   0xe   : > { %s3247_s8 = scalar_select %p2681_p3, 1, 0 }
   0xf   : > { %p2182_p5 = pneg %p2681_p3  ;;  %p2313_p7 = scmp.ne.s32.totalorder %s3237_s1, %s2312_s16 }
  0x10   : > { %p2319_p11 = scmp.lt.u32.totalorder %s2312_s16, %s3237_s1 }
  0x11   : > { %p2690_p6 = pnand %p2182_p5, %p3244_p1 }
  0x13   : > { %p2706_p8 = pneg %p2690_p6 }
  0x15   : > { %p2315_p9 = pnand %p2706_p8, %p2313_p7 }
  0x17   : > { %p2316_p10 = pneg %p2315_p9 }
  0x19   : > { %p2321_p12 = pnand %p2319_p11, %p2316_p10 }
  0x1b   : > { %2324 = shalt.err (!%p2321_p12)
}
  0x1c   : > { %s2325_s22 = scalar_lea.vmem %s2679_s29, 16  ;;  %s2332_s23 = scalar_lea.vmem %s2679_s29, 32 }
  0x1d   : > { %p2326_p13 = scmp.ne.s32.totalorder %s2679_s29, %s2325_s22  ;;  %p2333_p5 = scmp.lt.s32.totalorder %s2679_s29, %s2679_s29 }
  0x1e   : > { %p2334_p7 = scmp.lt.s32.totalorder %s2332_s23, %s2325_s22 }
  0x1f   : > { %p2328_p0 = pnand %p2326_p13, %p2706_p8 }
  0x20   : > { %p2335_p9 = por %p2334_p7, %p2333_p5 }
  0x21   : > { %p2329_p2 = pneg %p2328_p0 }
  0x23   : > { %p2336_p4 = pnand %p2335_p9, %p2329_p2 }
  0x25   : > { %2339 = shalt.err (!%p2336_p4)
}
  0x26   : > { %2185 = dma.hbm_to_vmem [thread:$0]  (!%p2690_p6), %s3237_s1, 16, %s2679_s29, [#allocation6]  }
  0x27   : > { %s2340_s15 = scalar_lea.hbm %s3239_s3, 256 }
  0x28   : > { %p2341_p10 = scmp.ne.s32.totalorder %s3239_s3, %s2340_s15  ;;  %p2347_p4 = scmp.lt.u32.totalorder %s2340_s15, %s3239_s3 }
  0x2a   : > { %p2343_p11 = pnand %p2341_p10, %p2706_p8 }
  0x2c   : > { %p2344_p12 = pneg %p2343_p11 }
  0x2e   : > { %p2349_p13 = pnand %p2347_p4, %p2344_p12 }
  0x30   : > { %2352 = shalt.err (!%p2349_p13)
}
  0x31   : > { %s2353_s29 = scalar_lea.vmem %s2694_s10, 256  ;;  %p2361_p7 = scmp.lt.s32.totalorder %s2694_s10, %s2694_s10 }
  0x32   : > { %p2354_p0 = scmp.ne.s32.totalorder %s2694_s10, %s2353_s29  ;;  %p2362_p9 = scmp.lt.s32.totalorder %s2353_s29, %s2353_s29 }
  0x34   : > { %p2356_p2 = pnand %p2354_p0, %p2706_p8  ;;  %p2363_p10 = por %p2362_p9, %p2361_p7 }
  0x36   : > { %p2357_p5 = pneg %p2356_p2 }
  0x38   : > { %p2364_p11 = pnand %p2363_p10, %p2357_p5 }
  0x3a   : > { %2367 = shalt.err (!%p2364_p11)
}
  0x3b   : > { %s2593_s21 = smov 64   ;;  %s2594_s22 = smov 4  }
  0x3c   : > { %2191 = dma.hbm_to_vmem [thread:$0]  (!%p2690_p6), %s3239_s3, 256, %s2694_s10, [#allocation9], %s2593_s21, %s2593_s21, %s2594_s22  }
  0x3d   : > { %s2368_s14 = scalar_lea.hbm %s3241_s5, 256 }
  0x3e   : > { %p2369_p12 = scmp.ne.s32.totalorder %s3241_s5, %s2368_s14  ;;  %p2375_p0 = scmp.lt.u32.totalorder %s2368_s14, %s3241_s5 }
  0x40   : > { %p2371_p4 = pnand %p2369_p12, %p2706_p8 }
  0x42   : > { %p2372_p13 = pneg %p2371_p4 }
  0x44   : > { %p2377_p2 = pnand %p2375_p0, %p2372_p13 }
  0x46   : > { %2380 = shalt.err (!%p2377_p2)
}
  0x47   : > { %s2381_s10 = scalar_lea.vmem %s2696_s13, 256  ;;  %p2389_p10 = scmp.lt.s32.totalorder %s2696_s13, %s2696_s13 }
  0x48   : > { %p2382_p5 = scmp.ne.s32.totalorder %s2696_s13, %s2381_s10  ;;  %p2390_p11 = scmp.lt.s32.totalorder %s2381_s10, %s2381_s10 }
  0x4a   : > { %p2384_p7 = pnand %p2382_p5, %p2706_p8  ;;  %p2391_p12 = por %p2390_p11, %p2389_p10 }
  0x4c   : > { %p2385_p9 = pneg %p2384_p7 }
  0x4e   : > { %p2392_p4 = pnand %p2391_p12, %p2385_p9 }
  0x50   : > { %2395 = shalt.err (!%p2392_p4)
}
  0x51   : > { %2197 = dma.hbm_to_vmem [thread:$0]  (!%p2690_p6), %s3241_s5, 256, %s2696_s13, [#allocation12], %s2593_s21, %s2593_s21, %s2594_s22  }
  0x52   : > { %s2595_s23 = smov [#allocation7]   ;;  %s2596_s9 = smov [#allocation10]  }
  0x53   : > { %s232_s28 = sshll.u32 %s2595_s23, 4  ;;  %s259_s12 = sshll.u32 %s2596_s9, 4  ;;  %s233_s28 = int_to_ptr.vmem [resolvable:$true] %s232_s28  ;;  %s260_s12 = int_to_ptr.vmem [resolvable:$true] %s259_s12 }
  0x54   : > { %s2396_s16 = scalar_lea.hbm %s3238_s2, 256 }
  0x55   : > { %p2397_p13 = scmp.ne.s32.totalorder %s3238_s2, %s2396_s16  ;;  %p2403_p5 = scmp.lt.u32.totalorder %s2396_s16, %s3238_s2 }
  0x57   : > { %p2399_p0 = pnand %p2397_p13, %p2706_p8 }
  0x59   : > { %p2400_p2 = pneg %p2399_p0 }
  0x5b   : > { %p2405_p7 = pnand %p2403_p5, %p2400_p2 }
  0x5d   : > { %2408 = shalt.err (!%p2405_p7)
}
  0x5e   : > { %s2409_s13 = scalar_lea.vmem %s233_s28, 256  ;;  %p2417_p12 = scmp.lt.s32.totalorder %s233_s28, %s233_s28 }
  0x5f   : > { %p2410_p9 = scmp.ne.s32.totalorder %s233_s28, %s2409_s13  ;;  %p2418_p4 = scmp.lt.s32.totalorder %s2409_s13, %s2409_s13 }
  0x61   : > { %p2412_p10 = pnand %p2410_p9, %p2706_p8  ;;  %p2419_p1 = por %p2418_p4, %p2417_p12 }
  0x63   : > { %p2413_p11 = pneg %p2412_p10 }
  0x65   : > { %p2420_p3 = pnand %p2419_p1, %p2413_p11 }
  0x67   : > { %2423 = shalt.err (!%p2420_p3)
}
  0x68   : > { %2188 = dma.hbm_to_vmem [thread:$0]  (!%p2690_p6), %s3238_s2, 256, %s233_s28, [#allocation6], %s2593_s21, %s2593_s21, %s2594_s22  }
  0x69   : > { %s2424_s15 = scalar_lea.hbm %s3240_s4, 16 }
  0x6a   : > { %p2425_p1 = scmp.ne.s32.totalorder %s3240_s4, %s2424_s15  ;;  %p2431_p0 = scmp.lt.u32.totalorder %s2424_s15, %s3240_s4 }
  0x6c   : > { %p2427_p3 = pnand %p2425_p1, %p2706_p8 }
  0x6e   : > { %p2428_p13 = pneg %p2427_p3 }
  0x70   : > { %p2433_p2 = pnand %p2431_p0, %p2428_p13 }
  0x72   : > { %2436 = shalt.err (!%p2433_p2)
}
  0x73   : > { %s2437_s20 = scalar_lea.vmem %s260_s12, 16  ;;  %s2444_s28 = scalar_lea.vmem %s260_s12, 32 }
  0x74   : > { %p2438_p5 = scmp.ne.s32.totalorder %s260_s12, %s2437_s20  ;;  %p2445_p10 = scmp.lt.s32.totalorder %s260_s12, %s260_s12 }
  0x75   : > { %p2446_p11 = scmp.lt.s32.totalorder %s2444_s28, %s2437_s20 }
  0x76   : > { %p2440_p7 = pnand %p2438_p5, %p2706_p8 }
  0x77   : > { %p2447_p12 = por %p2446_p11, %p2445_p10 }
  0x78   : > { %p2441_p9 = pneg %p2440_p7 }
  0x7a   : > { %p2448_p4 = pnand %p2447_p12, %p2441_p9 }
  0x7c   : > { %2451 = shalt.err (!%p2448_p4)
}
  0x7d   : > { %2194 = dma.hbm_to_vmem [thread:$0]  (!%p2690_p6), %s3240_s4, 16, %s260_s12, [#allocation9]  }
  0x7e   : > { %s2597_s23 = smov [#allocation13]   ;;  %s2452_s16 = scalar_lea.hbm %s3242_s6, 1024 }
  0x7f   : > { %s282_s9 = sshll.u32 %s2597_s23, 4  ;;  %p2453_p1 = scmp.ne.s32.totalorder %s3242_s6, %s2452_s16  ;;  %s283_s9 = int_to_ptr.vmem [resolvable:$true] %s282_s9 }
  0x80   : > { %p2459_p0 = scmp.lt.u32.totalorder %s2452_s16, %s3242_s6 }
  0x81   : > { %p2455_p3 = pnand %p2453_p1, %p2706_p8 }
  0x83   : > { %p2456_p13 = pneg %p2455_p3 }
  0x85   : > { %p2461_p2 = pnand %p2459_p0, %p2456_p13 }
  0x87   : > { %2464 = shalt.err (!%p2461_p2)
}
  0x88   : > { %s2465_s12 = scalar_lea.vmem %s283_s9, 1024  ;;  %p2473_p10 = scmp.lt.s32.totalorder %s283_s9, %s283_s9 }
  0x89   : > { %p2466_p5 = scmp.ne.s32.totalorder %s283_s9, %s2465_s12  ;;  %p2474_p11 = scmp.lt.s32.totalorder %s2465_s12, %s2465_s12 }
  0x8b   : > { %p2468_p7 = pnand %p2466_p5, %p2706_p8  ;;  %p2475_p12 = por %p2474_p11, %p2473_p10 }
  0x8d   : > { %p2469_p9 = pneg %p2468_p7 }
  0x8f   : > { %p2476_p4 = pnand %p2475_p12, %p2469_p9 }
  0x91   : > { %2479 = shalt.err (!%p2476_p4)
}
  0x92   : > { %2200 = dma.hbm_to_vmem [thread:$0]  (!%p2690_p6), %s3242_s6, 1024, %s283_s9, [#allocation12], %s2593_s21, %s2593_s21, %s2594_s22  }
  0x93   : > { %s1977_s11 = sadd.s32 4294967294, %s2588_s27   ;;  %s2842_s19 = sadd.s32 1, %s2588_s27  }
  0x94   : > { %s30_s29 = ssub.s32 %s2588_s27, %s2842_s19  ;;  %s33_s23 = sadd.s32 1, %s2584_s26 }
  0x95   : > { %p31_p8 = scmp.eq.s32.totalorder %s30_s29, 0  ;;  %p40_p1 = scmp.ne.s32.totalorder %s2584_s26, %s2580_s25 }
  0x96   : > { %p41_p3 = scmp.eq.s32.totalorder %s2588_s27, 0  ;;  %p46_p13 = scmp.ne.s32.totalorder %s2580_s25, %s2576_s24 }
  0x97   : > { %s2853_s14 = scalar_select %p31_p8, %s2584_s26, %s33_s23  }
  0x98   : > { %p2855_p0 = por %p41_p3, %p40_p1  ;;  %p3251_p2 = scmp.eq.s32.totalorder %s2674_s30, 0 }
  0x99   : > { %p196_p5 = scmp.eq.s32.totalorder %s2674_s30, 1  ;;  %p202_p7 = scmp.eq.s32.totalorder %s1977_s11, 1 }
  0x9a   : > { %p2861_p6 = por %p3251_p2, %p46_p13  ;;  %p2215_p9 = scmp.lt.s32.totalorder %s2588_s27, 2 }
  0x9b   : > { %s296_s22 = sand.u32 1, %s2584_s26   ;;  %p2868_p10 = por %p196_p5, %p40_p1 }
  0x9c   : > { %p2872_p11 = por %p202_p7, %p46_p13  ;;  %s1986_s17 = sshll.u32 %s296_s22, 2 }
  0x9d   : > { %s3253_s9 = scalar_select %p2868_p10, 1, 0 }
  0x9e   : > { %s3254_s16 = scalar_select %p2872_p11, 1, 0 }
  0x9f   : > { %s1987_s18 = sshll.u32 %s2588_s27, 6  ;;  %s300_s28 = scalar_lea.vmem [#allocation2], %s1986_s17 }
  0xa0   : > { %s2880_s12 = scalar_lea.hbm %s3236_s0, %s1987_s18  ;;  %s307_s13 = sshll.u32 %s300_s28, 4  ;;  %s2882_s13 = int_to_ptr.vmem [resolvable:$true] %s307_s13 }
  0xa1   : > { %p2886_p12 = pnand %p2215_p9, %p2855_p0  ;;  %s297_s29 = scalar_lea.sflag [#allocation3], %s296_s22 }
  0xa2   : > { %s2480_s23 = scalar_lea.hbm %s2880_s12, 64  ;;  %s2485_s10 = scalar_lea.hbm %s3236_s0, 128 }
  0xa3   : > { %p2481_p4 = scmp.ne.s32.totalorder %s2880_s12, %s2480_s23  ;;  %p2482_p8 = pneg %p2886_p12 }
  0xa4   : > { %p2486_p13 = scmp.lt.u32.totalorder %s2880_s12, %s3236_s0  ;;  %p2487_p0 = scmp.lt.u32.totalorder %s2485_s10, %s2480_s23 }
  0xa5   : > { %p2483_p1 = pnand %p2482_p8, %p2481_p4  ;;  %p2489_p5 = scmp.lt.u32.totalorder %s2480_s23, %s2880_s12 }
  0xa6   : > { %p2488_p2 = por %p2487_p0, %p2486_p13 }
  0xa7   : > { %p2484_p3 = pneg %p2483_p1 }
  0xa8   : > { %p2490_p7 = por %p2489_p5, %p2488_p2 }
  0xaa   : > { %p2491_p9 = pnand %p2490_p7, %p2484_p3 }
  0xac   : > { %2494 = shalt.err (!%p2491_p9)
}
  0xad   : > { %s2495_s22 = scalar_lea.vmem %s2882_s13, 64  ;;  %s2598_s28 = smov [#allocation2]  }
  0xae   : > { %p2496_p4 = scmp.ne.s32.totalorder %s2882_s13, %s2495_s22  ;;  %s2500_s17 = sshll.u32 %s2598_s28, 4  ;;  %s2501_s17 = int_to_ptr.vmem [resolvable:$false] %s2500_s17 }
  0xaf   : > { %s2502_s18 = scalar_lea.vmem %s2501_s17, 128  ;;  %p2503_p10 = scmp.lt.s32.totalorder %s2882_s13, %s2501_s17 }
  0xb0   : > { %p2498_p1 = pnand %p2496_p4, %p2482_p8  ;;  %p2504_p13 = scmp.lt.s32.totalorder %s2502_s18, %s2495_s22 }
  0xb2   : > { %p2499_p11 = pneg %p2498_p1  ;;  %p2505_p0 = por %p2504_p13, %p2503_p10 }
  0xb4   : > { %p2506_p2 = pnand %p2505_p0, %p2499_p11 }
  0xb6   : > { %2509 = shalt.err (!%p2506_p2)
}
  0xb7   : > { %2204 = dma.hbm_to_vmem [thread:$0]  (!%p2886_p12), %s2880_s12, 64, %s2882_s13, %s297_s29  }
  0xb8   : > { %p3256_p3 = scmp.ne.s32.totalorder %s3247_s8, 0 }
  0xb9   : > { %s2918_s23 = sand.u32 (!%p3256_p3), 1, %s2580_s25  }
  0xba   : > { %316 = sbr.rel (%p3256_p3) target bundleno = 2940 (0xb7c), region = 48  ;;  %s1989_s10 = sshll.u32 (!%p3256_p3), %s2918_s23, 2 }
  0xbb   : > { %s319_s15 = scalar_lea.sflag (!%p3256_p3), [#allocation3], %s2918_s23  ;;  %s322_s20 = scalar_lea.vmem (!%p3256_p3), [#allocation2], %s1989_s10 }
  0xc1   : > { %2555 = dma.done.wait (%p2861_p6), %s319_s15, 64  }
  0xc2   : > { %2557 = vsyncadd (%p2861_p6), %s319_s15, 4294967232  ;;  %p3257_p10 = scmp.eq.s32.totalorder %s2674_s30, 0 }
  0xc4   : > { %2559 = dma.done.wait (%p3257_p10), [#allocation6], 272   ;;  %p3258_p11 = pmov %p3257_p10 }
  0xc5   : > { %p3259_p12 = pmov %p3257_p10 }
  0xc6   : > { %2561 = vsyncadd (%p3258_p11), [#allocation6], 4294967024 }
  0xc7   : > { %2563 = dma.done.wait (%p3259_p12), [#allocation9], 272   ;;  %p3260_p8 = pmov %p3257_p10 }
  0xc9   : > { %2565 = vsyncadd (%p3260_p8), [#allocation9], 4294967024  ;;  %p3261_p5 = pmov %p3260_p8 }
  0xcb   : > { %2567 = dma.done.wait (%p3261_p5), [#allocation12], 1280   ;;  %p3262_p7 = pmov %p3261_p5 }
  0xcc   : > { %vm381_vm0 = vcmask 261120   ;;  %v378_v0 = vld [vmem:[%s322_s20] sm:$0xf]  ;;  %v2276_v8 = vld [vmem:[#allocation7] sm:$0xff]   ;;  %v2599_v9 = vmov 0.0   ;;  %vm2600_vm1 = vmmov 0   ;;  %v474_v29 = vlaneseq }
  0xcd   : > { %2569 = vsyncadd (%p3262_p7), [#allocation12], 4294966016  ;;  %v2940_v1 = vunpack.c.l.bf16 %v378_v0  ;;  %2062 = vmatprep.subr.bf16.mxu0 %v2599_v9  ;;  %2066 = vmatprep.mubr.msk.bf16.mxu0 %vm2600_vm1, %v2599_v9  ;;  %v2277_v10 = vld [vmem:[#allocation7 + $0x8] sm:$0xff]   ;;  %v1997_v15 = vld [vmem:[#allocation5] ss:$0 sm:$0xff]  ;;  %s2601_s8 = smov 104  }
  0xce   : > { %2063 = vmatpush3.bf16.msra.mxu0 %v2276_v8  ;;  %2082 = vmatprep.subr.bf16.mxu1 %v2599_v9  ;;  %s2602_s21 = smov 120   ;;  %s2603_s12 = smov 112   ;;  %v2605_v27 = vmov 1983009808   ;;  %v2973_v31 = vshrl.u32 %v474_v29, 7  ;;  %v2607_v54 = vmov 0  }
  0xcf   : > { %v382_v2 = vsel %vm381_vm0, %v2940_v1, 0.0  ;;  %2064 = vmatprep.subr.bf16.mxu0 %v2599_v9  ;;  %2084 = vmatprep.mubr.msk.bf16.mxu1 %vm2600_vm1, %v2599_v9  ;;  %s2604_s13 = smov 96   ;;  %v472_v28 = vunpack.c.l.s4 %v2605_v27  ;;  %v2606_v32 = vmov 1934713408   ;;  %vm972_vm2 = vcmask 64512   ;;  %s2608_s11 = smov 64  }
  0xd0   : > { %383 = vadd.xlane.f32.xlu0 %v382_v2  ;;  %v489_v33 = vunpack.c.l.s4 %v2606_v32  ;;  %vm1223_vm4 = vcmask 1043456   ;;  %s2609_s29 = smov 8   ;;  %s2610_s22 = smov 16   ;;  %vm1576_vm5 = vcmask 130048   ;;  %vm1579_vm6 = vcmask 195584  }
  0xd1   : > { %v473_v30 = vunpack.c.0.s8 %v472_v28  ;;  %s2611_s28 = smov 24   ;;  %s2025_s17 = sshll.u32 %s2674_s30, 6  ;;  %vm1834_vm7 = vcmask 257024  }
  0xd2   : > { %2065 = vmatpush3.bf16.msra.mxu0 %v2277_v10  ;;  %v490_v37 = vunpack.c.0.s8 %v489_v33  ;;  %s376_s18 = scalar_lea.vmem [#allocation14], %s1989_s10  ;;  %s1837_s30 = scalar_lea.sflag [#allocation4], %s2918_s23 }
  0xd3   : > { %2070 = vmatprep.subr.bf16.mxu0 %v2599_v9  ;;  %v2976_v34 = vsub.s32 %v473_v30, %v2973_v31  ;;  %s1850_s15 = sshll.u32 %s376_s18, 4  ;;  %p3263_p9 = scmp.ne.s32.totalorder %s3253_s9, 0  ;;  %s3194_s15 = int_to_ptr.vmem [resolvable:$true] %s1850_s15 }
  0xd4   : > { %v2987_v43 = vsub.s32 %v490_v37, %v2973_v31  ;;  %s2510_s10 = scalar_lea.vmem %s3194_s15, 64 }
  0xd5   : > { %p2511_p6 = scmp.ne.s32.totalorder %s3194_s15, %s2510_s10 }
  0xd7   : > { %p2512_p4 = pnand %p2511_p6, %p3263_p9 }
  0xd9   : > { %p2513_p1 = pneg %p2512_p4 }
 0x15d   : > { %v384_v3 = vpop.xlane.xlu0 %383 }
 0x15e   : > { %v386_v4 = vmul.f32 0.03125, %v384_v3 }
 0x160   : > { %v387_v5 = vsub.f32 %v2940_v1, %v386_v4 }
 0x162   : > { %v388_v6 = vmul.f32 %v387_v5, %v387_v5 }
 0x164   : > { %v389_v7 = vsel %vm381_vm0, %v388_v6, 0.0 }
 0x165   : > { %390 = vadd.xlane.f32.xlu0 %v389_v7 }
 0x1f2   : > { %v391_v11 = vpop.xlane.xlu0 %390 }
 0x1f3   : > { %v392_v12 = vmul.f32 0.03125, %v391_v11 }
 0x1f5   : > { %v393_v13 = vadd.f32 1e-05, %v392_v12 }
 0x1f7   : > { %2290 = vrsqrt.f32 %v393_v13 }
 0x201   : > { %v2291_v14 = vpop.eup %2290 }
 0x202   : > { %v395_v16 = vmul.f32 %v2291_v14, %v387_v5 }
 0x204   : > { %v402_v17 = vmul.f32 %v1997_v15, %v395_v16 }
 0x206   : > { %v403_v18 = vpack.c.bf16 %v402_v17, %v402_v17 }
 0x208   : > { %2067 = vmatmul.mubr.msk.bf16.vlgmr.msra.gmra.mrb[0].mxu0 %vm381_vm0, %v403_v18 }
 0x209   : > { %2072 = vmatprep.mubr.msk.bf16.mxu0 %vm2600_vm1, %v2599_v9 }
 0x2db   : > { %v457_v19 = vpop.f32.mrb[0].mxu0 }
 0x2dc   : > { %v2957_v20 = vpack.c.bf16 %v457_v19, %v457_v19  ;;  %v2068_v21 = vpop.f32.mrb[1].mxu0 }
 0x2dd   : > { %v460_v22 = vpop.f32.mrb[2].mxu0 }
 0x2de   : > { %469 = vrot.lane.b32.xlu0 %v2957_v20, %s2601_s8  ;;  %465 = vrot.lane.b32.xlu1 %v2957_v20, %s2602_s21  ;;  %v2069_v23 = vpop.f32.mrb[3].mxu0  ;;  %v477_v40 = vrot.slane %v2957_v20, %v2976_v34  ;;  %s3192_s21 = scalar_lea.hbm %s3243_s7, %s2025_s17 }
 0x2e2   : > { %467 = vrot.lane.b32.xlu1 %v2957_v20, %s2603_s12  ;;  %s2612_s12 = smov [#allocation14]  }
 0x2e6   : > { %632 = vrot.lane.b32.xlu1 %v2957_v20, %s2604_s13 }
 0x350   : > { %v2963_v24 = vpop.permute.xlu1 %465  ;;  %v2969_v26 = vpop.permute.xlu0 %469 }
 0x351   : > { %634 = vrot.lane.b32.xlu1 %v2963_v24, %s2604_s13  ;;  %v519_v36 = vrot.slane %v2969_v26, %v2976_v34  ;;  %v511_v38 = vrot.slane %v2963_v24, %v2976_v34 }
 0x353   : > { %v520_v44 = vcombine.low %v511_v38, %v519_v36  ;;  %v521_v46 = vcombine.high %v511_v38, %v519_v36 }
 0x354   : > { %v2966_v25 = vpop.permute.xlu1 %467 }
 0x355   : > { %636 = vrot.lane.b32.xlu1 %v2966_v25, %s2604_s13  ;;  %v485_v35 = vrot.slane %v2966_v25, %v2976_v34  ;;  %v2996_v49 = vrot.slane %v520_v44, %v2987_v43  ;;  %v2999_v51 = vrot.slane %v521_v46, %v2987_v43 }
 0x357   : > { %v486_v41 = vcombine.low %v477_v40, %v485_v35  ;;  %v487_v42 = vcombine.high %v477_v40, %v485_v35  ;;  %v536_v59 = vcombine.high %v2996_v49, %v2607_v54  ;;  %v537_v61 = vcombine.high %v2999_v51, %v2607_v54 }
 0x358   : > { %v633_v39 = vpop.permute.xlu1 %632  ;;  %v543_v4 = vshrl.u32 %v2996_v49, 16  ;;  %v559_v10 = vshrl.u32 %v2999_v51, 16 }
 0x359   : > { %638 = vrot.lane.b32.xlu1 %v2969_v26, %s2604_s13  ;;  %v2990_v47 = vrot.slane %v486_v41, %v2987_v43  ;;  %v2993_v48 = vrot.slane %v487_v42, %v2987_v43  ;;  %v647_v52 = vrot.slane %v633_v39, %v2976_v34  ;;  %v551_v8 = vshrl.u32 %v536_v59, 16  ;;  %s2514_s13 = sshll.u32 %s2612_s12, 4  ;;  %s2515_s13 = int_to_ptr.vmem [resolvable:$false] %s2514_s13 }
 0x35a   : > { %v567_v13 = vshrl.u32 %v537_v61, 16  ;;  %p2517_p13 = scmp.lt.s32.totalorder %s3194_s15, %s2515_s13 }
 0x35b   : > { %v502_v55 = vcombine.high %v2990_v47, %v2607_v54  ;;  %v503_v56 = vcombine.high %v2993_v48, %v2607_v54  ;;  %v542_v62 = vshrl.u32 %v2990_v47, 16  ;;  %v558_v2 = vshrl.u32 %v2993_v48, 16 }
 0x35d   : > { %v550_v5 = vshrl.u32 %v502_v55, 16  ;;  %v566_v6 = vshrl.u32 %v503_v56, 16  ;;  %v544_v14 = vpack.i.b16 %v543_v4, %v542_v62  ;;  %v548_v15 = vpack.i.b16 %v536_v59, %v502_v55 }
 0x35e   : > { %v560_v17 = vpack.i.b16 %v559_v10, %v558_v2  ;;  %v564_v18 = vpack.i.b16 %v537_v61, %v503_v56 }
 0x35f   : > { %v552_v22 = vpack.i.b16 %v551_v8, %v550_v5  ;;  %v568_v23 = vpack.i.b16 %v567_v13, %v566_v6 }
 0x3c3   : > { %v635_v45 = vpop.permute.xlu1 %634 }
 0x3c4   : > { %v681_v3 = vrot.slane %v635_v45, %v2976_v34 }
 0x3c7   : > { %v637_v50 = vpop.permute.xlu1 %636 }
 0x3c8   : > { %v655_v53 = vrot.slane %v637_v50, %v2976_v34 }
 0x3ca   : > { %v656_v57 = vcombine.low %v647_v52, %v655_v53  ;;  %v657_v58 = vcombine.high %v647_v52, %v655_v53  ;;  %v540_v53 = vpack.i.b16 %v2996_v49, %v2990_v47 }
 0x3cb   : > { %v639_v60 = vpop.permute.xlu1 %638 }
 0x3cc   : > { %v664_v63 = vrot.slane %v656_v57, %v2987_v43  ;;  %v689_v0 = vrot.slane %v639_v60, %v2976_v34  ;;  %v671_v7 = vrot.slane %v657_v58, %v2987_v43  ;;  %v556_v57 = vpack.i.b16 %v2999_v51, %v2993_v48 }
 0x3cd   : > { %v603_v58 = vcombine.low %v552_v22, %v568_v23 }
 0x3ce   : > { %v690_v11 = vcombine.low %v681_v3, %v689_v0  ;;  %v691_v12 = vcombine.high %v681_v3, %v689_v0  ;;  %v672_v16 = vcombine.high %v664_v63, %v2607_v54  ;;  %v673_v27 = vcombine.high %v671_v7, %v2607_v54 }
 0x3cf   : > { %v712_v28 = vshrl.u32 %v664_v63, 16  ;;  %v728_v37 = vshrl.u32 %v671_v7, 16  ;;  %v595_v0 = vcombine.low %v544_v14, %v560_v17  ;;  %v570_v4 = vcombine.low %v540_v53, %v556_v57 }
 0x3d0   : > { %v698_v19 = vrot.slane %v690_v11, %v2987_v43  ;;  %v705_v21 = vrot.slane %v691_v12, %v2987_v43  ;;  %v720_v36 = vshrl.u32 %v672_v16, 16  ;;  %v736_v45 = vshrl.u32 %v673_v27, 16 }
 0x3d1   : > { %v610_v5 = vrot.slane %v603_v58, %v2976_v34  ;;  %v602_v51 = vrot.slane %v595_v0, %v2976_v34  ;;  %v577_v8 = vrot.slane %v570_v4, %v2976_v34 }
 0x3d2   : > { %v706_v30 = vcombine.high %v698_v19, %v2607_v54  ;;  %v707_v32 = vcombine.high %v705_v21, %v2607_v54  ;;  %v710_v33 = vpack.i.b16 %v698_v19, %v664_v63  ;;  %v713_v35 = vshrl.u32 %v698_v19, 16 }
 0x3d3   : > { %v726_v38 = vpack.i.b16 %v705_v21, %v671_v7  ;;  %v729_v39 = vshrl.u32 %v705_v21, 16  ;;  %v578_v63 = vcombine.low %v548_v15, %v564_v18  ;;  %v611_v11 = vcombine.low %v602_v51, %v610_v5 }
 0x3d4   : > { %v714_v40 = vpack.i.b16 %v713_v35, %v712_v28  ;;  %v718_v41 = vpack.i.b16 %v706_v30, %v672_v16  ;;  %v721_v42 = vshrl.u32 %v706_v30, 16  ;;  %v734_v44 = vpack.i.b16 %v707_v32, %v673_v27 }
 0x3d5   : > { %v730_v46 = vpack.i.b16 %v729_v39, %v728_v37  ;;  %v737_v50 = vshrl.u32 %v707_v32, 16  ;;  %v740_v52 = vcombine.low %v710_v33, %v726_v38  ;;  %v585_v48 = vrot.slane %v578_v63, %v2976_v34 }
 0x3d6   : > { %v722_v55 = vpack.i.b16 %v721_v42, %v720_v36  ;;  %v748_v56 = vcombine.low %v718_v41, %v734_v44  ;;  %v618_v18 = vrot.slane %v611_v11, %v2987_v43 }
 0x3d7   : > { %v738_v59 = vpack.i.b16 %v737_v50, %v736_v45  ;;  %v765_v60 = vcombine.low %v714_v40, %v730_v46  ;;  %v747_v61 = vrot.slane %v740_v52, %v2976_v34  ;;  %v586_v12 = vcombine.low %v577_v8, %v585_v48 }
 0x3d8   : > { %v755_v62 = vrot.slane %v748_v56, %v2976_v34  ;;  %v619_v28 = vcombine.high %v618_v18, %v2607_v54  ;;  %v624_v38 = vshrl.u32 %v618_v18, 16  ;;  %v1160_v50 = vand.u32 127, %v474_v29 }
 0x3d9   : > { %v773_v2 = vcombine.low %v722_v55, %v738_v59  ;;  %v772_v47 = vrot.slane %v765_v60, %v2976_v34  ;;  %v593_v22 = vrot.slane %v586_v12, %v2987_v43 }
 0x3da   : > { %v756_v3 = vcombine.low %v747_v61, %v755_v62  ;;  %v630_v44 = vshrl.u32 %v619_v28, 16  ;;  %vm1161_vm3 = vcmp.le.s32.totalorder %v1160_v50, %v2973_v31 }
 0x3db   : > { %v780_v49 = vrot.slane %v773_v2, %v2976_v34  ;;  %v622_v30 = vpack.i.b16 %v618_v18, %v593_v22  ;;  %v594_v32 = vcombine.high %v593_v22, %v2607_v54  ;;  %v623_v39 = vshrl.u32 %v593_v22, 16 }
 0x3dc   : > { %v763_v6 = vrot.slane %v756_v3, %v2987_v43 }
 0x3dd   : > { %v781_v7 = vcombine.low %v772_v47, %v780_v49  ;;  %v628_v36 = vpack.i.b16 %v619_v28, %v594_v32  ;;  %v625_v41 = vpack.i.b16 %v624_v38, %v623_v39  ;;  %v629_v45 = vshrl.u32 %v594_v32, 16 }
 0x3de   : > { %v764_v14 = vcombine.high %v763_v6, %v2607_v54  ;;  %v793_v23 = vshrl.u32 %v763_v6, 16 }
 0x3df   : > { %v788_v10 = vrot.slane %v781_v7, %v2987_v43  ;;  %v631_v46 = vpack.i.b16 %v630_v44, %v629_v45 }
 0x3e0   : > { %v799_v37 = vshrl.u32 %v764_v14, 16 }
 0x3e1   : > { %v792_v13 = vpack.i.b16 %v788_v10, %v763_v6  ;;  %v789_v15 = vcombine.high %v788_v10, %v2607_v54  ;;  %v794_v19 = vshrl.u32 %v788_v10, 16 }
 0x3e3   : > { %v977_v16 = vsel %vm972_vm2, %v792_v13, 0  ;;  %v798_v17 = vpack.i.b16 %v789_v15, %v764_v14  ;;  %v795_v27 = vpack.i.b16 %v794_v19, %v793_v23  ;;  %v800_v33 = vshrl.u32 %v789_v15, 16 }
 0x3e4   : > { %2071 = vmatpush3.bf16.xpose.msra.mxu0 %v977_v16 }
 0x3e5   : > { %v1069_v21 = vsel %vm972_vm2, %v798_v17, 0  ;;  %2076 = vmatprep.subr.bf16.mxu0 %v2599_v9  ;;  %v1023_v35 = vsel %vm972_vm2, %v795_v27, 0  ;;  %v801_v40 = vpack.i.b16 %v800_v33, %v799_v37 }
 0x3e6   : > { %2083 = vmatpush3.bf16.xpose.msra.mxu1 %v1069_v21 }
 0x3e7   : > { %2094 = vmatprep.subr.bf16.mxu1 %v2599_v9  ;;  %v1115_v42 = vsel %vm972_vm2, %v801_v40, 0 }
 0x3eb   : > { %2073 = vmatmul.mubr.msk.bf16.vlgmr.msra.gmra.mrb[4].mxu0 %vm972_vm2, %v622_v30 }
 0x3ec   : > { %2077 = vmatpush3.bf16.xpose.msra.mxu0 %v1023_v35  ;;  %2078 = vmatprep.mubr.msk.bf16.mxu0 %vm2600_vm1, %v2599_v9 }
 0x3ed   : > { %2085 = vmatmul.mubr.msk.bf16.vlgmr.msra.gmra.mrb[0].mxu1 %vm972_vm2, %v628_v36  ;;  %2088 = vmatprep.subr.bf16.mxu0 %v2599_v9 }
 0x3ee   : > { %2096 = vmatprep.mubr.msk.bf16.mxu1 %vm2600_vm1, %v2599_v9 }
 0x3f3   : > { %2079 = vmatmul.mubr.msk.bf16.vlgmr.msra.gmra.mrb[8].mxu0 %vm972_vm2, %v625_v41 }
 0x3f4   : > { %2089 = vmatpush3.bf16.xpose.msra.mxu0 %v1115_v42  ;;  %2090 = vmatprep.mubr.msk.bf16.mxu0 %vm2600_vm1, %v2599_v9 }
 0x3f5   : > { %2100 = vmatprep.subr.bf16.mxu0 %v2599_v9 }
 0x3fb   : > { %2091 = vmatmul.mubr.msk.bf16.vlgmr.msra.gmra.mrb[12].mxu0 %vm972_vm2, %v631_v46 }
 0x3fc   : > { %2102 = vmatprep.mubr.msk.bf16.mxu0 %vm2600_vm1, %v2599_v9 }
 0x4be   : > { %v1013_v52 = vpop.f32.mrb[4].mxu0 }
 0x4bf   : > { %v1164_v53 = vsel %vm1161_vm3, %v1013_v52, -inf  ;;  %v2074_v55 = vpop.f32.mrb[5].mxu0 }
 0x4c0   : > { %v1016_v56 = vpop.f32.mrb[6].mxu0  ;;  %v1105_v57 = vpop.f32.mrb[0].mxu1  ;;  %v1168_v58 = vsel %vm972_vm2, %v1164_v53, -inf }
 0x4c1   : > { %v1166_v59 = vsel %vm1161_vm3, %v1105_v57, -inf  ;;  %v2086_v60 = vpop.f32.mrb[1].mxu1  ;;  %1169 = vmax.xlane.f32.xlu1 %v1168_v58  ;;  %v2075_v61 = vpop.f32.mrb[7].mxu0 }
 0x4c2   : > { %v1108_v62 = vpop.f32.mrb[2].mxu1  ;;  %v1174_v29 = vsel %vm972_vm2, %v1166_v59, -inf }
 0x4c3   : > { %v2087_v63 = vpop.f32.mrb[3].mxu1 }
 0x4c5   : > { %1175 = vmax.xlane.f32.xlu1 %v1174_v29 }
 0x4c6   : > { %v1059_v0 = vpop.f32.mrb[8].mxu0 }
 0x4c7   : > { %v1165_v2 = vsel %vm1161_vm3, %v1059_v0, -inf  ;;  %v2080_v3 = vpop.f32.mrb[9].mxu0 }
 0x4c8   : > { %v1062_v4 = vpop.f32.mrb[10].mxu0  ;;  %v1171_v5 = vsel %vm972_vm2, %v1165_v2, -inf }
 0x4c9   : > { %1172 = vmax.xlane.f32.xlu0 %v1171_v5  ;;  %v2081_v47 = vpop.f32.mrb[11].mxu0 }
 0x4ce   : > { %v1151_v49 = vpop.f32.mrb[12].mxu0 }
 0x4cf   : > { %v1167_v48 = vsel %vm1161_vm3, %v1151_v49, -inf  ;;  %v2092_v51 = vpop.f32.mrb[13].mxu0 }
 0x4d0   : > { %v1154_v6 = vpop.f32.mrb[14].mxu0  ;;  %v1177_v7 = vsel %vm972_vm2, %v1167_v48, -inf }
 0x4d1   : > { %1178 = vmax.xlane.f32.xlu0 %v1177_v7  ;;  %v2093_v8 = vpop.f32.mrb[15].mxu0 }
 0x4d6   : > { %802 = vrot.lane.b32.xlu1 %v2957_v20, %s2608_s11 }
 0x54e   : > { %v1170_v10 = vpop.xlane.xlu1 %1169 }
 0x54f   : > { %v1180_v11 = vsub.f32 %v1164_v53, %v1170_v10 }
 0x551   : > { %v1184_v12 = vmul.f32 1.442695, %v1180_v11 }
 0x552   : > { %v1176_v21 = vpop.xlane.xlu1 %1175 }
 0x553   : > { %2292 = vpow2.f32 %v1184_v12  ;;  %v1182_v22 = vsub.f32 %v1166_v59, %v1176_v21 }
 0x555   : > { %v1188_v27 = vmul.f32 1.442695, %v1182_v22 }
 0x556   : > { %v1173_v13 = vpop.xlane.xlu0 %1172 }
 0x557   : > { %v1181_v14 = vsub.f32 %v1165_v2, %v1173_v13 }
 0x559   : > { %v1186_v15 = vmul.f32 1.442695, %v1181_v14 }
 0x55b   : > { %2294 = vpow2.f32 %v1186_v15 }
 0x55d   : > { %v3080_v16 = vpop.eup %2292 }
 0x55e   : > { %v1192_v31 = vsel %vm972_vm2, %v3080_v16, 0.0  ;;  %v1179_v20 = vpop.xlane.xlu0 %1178 }
 0x55f   : > { %1193 = vadd.xlane.f32.xlu1 %v1192_v31  ;;  %v1183_v19 = vsub.f32 %v1167_v48, %v1179_v20 }
 0x561   : > { %v1190_v23 = vmul.f32 1.442695, %v1183_v19 }
 0x563   : > { %2296 = vpow2.f32 %v1190_v23 }
 0x564   : > { %2298 = vpow2.f32 %v1188_v27 }
 0x565   : > { %v3084_v17 = vpop.eup %2294 }
 0x566   : > { %v1195_v18 = vsel %vm972_vm2, %v3084_v17, 0.0 }
 0x567   : > { %1196 = vadd.xlane.f32.xlu0 %v1195_v18 }
 0x56d   : > { %v3091_v28 = vpop.eup %2296 }
 0x56e   : > { %v1201_v30 = vsel %vm972_vm2, %v3091_v28, 0.0  ;;  %v3095_v32 = vpop.eup %2298 }
 0x570   : > { %806 = vrot.lane.b32.xlu1 %v2966_v25, %s2608_s11  ;;  %v1198_v25 = vsel %vm972_vm2, %v3095_v32, 0.0 }
 0x574   : > { %808 = vrot.lane.b32.xlu1 %v2969_v26, %s2608_s11 }
 0x57d   : > { %804 = vrot.lane.b32.xlu0 %v2963_v24, %s2608_s11  ;;  %v803_v24 = vpop.permute.xlu1 %802  ;;  %s2516_s11 = scalar_lea.vmem %s2515_s13, 128 }
 0x57e   : > { %v817_v36 = vrot.slane %v803_v24, %v2976_v34  ;;  %p2518_p0 = scmp.lt.s32.totalorder %s2516_s11, %s2510_s10 }
 0x580   : > { %p2519_p2 = por %p2518_p0, %p2517_p13 }
 0x582   : > { %p2520_p3 = pnand %p2519_p2, %p2513_p1 }
 0x598   : > { %1202 = vadd.xlane.f32.xlu1 %v1201_v30 }
 0x59c   : > { %1199 = vadd.xlane.f32.xlu0 %v1198_v25 }
 0x5ec   : > { %v1194_v26 = vpop.xlane.xlu1 %1193 }
 0x5ed   : > { %2300 = vrcp.f32 %v1194_v26 }
 0x5f0   : > { %v807_v33 = vpop.permute.xlu1 %806 }
 0x5f1   : > { %v825_v35 = vrot.slane %v807_v33, %v2976_v34 }
 0x5f3   : > { %v826_v37 = vcombine.low %v817_v36, %v825_v35  ;;  %v827_v39 = vcombine.high %v817_v36, %v825_v35 }
 0x5f4   : > { %v1197_v38 = vpop.xlane.xlu0 %1196  ;;  %v809_v40 = vpop.permute.xlu1 %808 }
 0x5f5   : > { %v834_v41 = vrot.slane %v826_v37, %v2987_v43  ;;  %v859_v44 = vrot.slane %v809_v40, %v2976_v34  ;;  %v841_v46 = vrot.slane %v827_v39, %v2987_v43  ;;  %2302 = vrcp.f32 %v1197_v38 }
 0x5f7   : > { %v842_v53 = vcombine.high %v834_v41, %v2607_v54  ;;  %v843_v57 = vcombine.high %v841_v46, %v2607_v54  ;;  %v882_v58 = vshrl.u32 %v834_v41, 16  ;;  %v898_v29 = vshrl.u32 %v841_v46, 16  ;;  %v2301_v15 = vpop.eup %2300 }
 0x5f8   : > { %v805_v42 = vpop.permute.xlu0 %804  ;;  %v1212_v30 = vmul.f32 %v2301_v15, %v3080_v16 }
 0x5f9   : > { %v851_v45 = vrot.slane %v805_v42, %v2976_v34  ;;  %v890_v63 = vshrl.u32 %v842_v53, 16  ;;  %v906_v49 = vshrl.u32 %v843_v57, 16 }
 0x5fa   : > { %v1216_v42 = vpack.c.bf16 %v1212_v30, %v1212_v30 }
 0x5fb   : > { %v860_v50 = vcombine.low %v851_v45, %v859_v44  ;;  %v861_v52 = vcombine.high %v851_v45, %v859_v44 }
 0x5fd   : > { %v868_v55 = vrot.slane %v860_v50, %v2987_v43  ;;  %v875_v56 = vrot.slane %v861_v52, %v2987_v43 }
 0x5ff   : > { %v876_v59 = vcombine.high %v868_v55, %v2607_v54  ;;  %v877_v60 = vcombine.high %v875_v56, %v2607_v54  ;;  %v880_v61 = vpack.i.b16 %v868_v55, %v834_v41  ;;  %v883_v62 = vshrl.u32 %v868_v55, 16  ;;  %v2303_v18 = vpop.eup %2302 }
 0x600   : > { %v896_v0 = vpack.i.b16 %v875_v56, %v841_v46  ;;  %v899_v2 = vshrl.u32 %v875_v56, 16  ;;  %v1213_v35 = vmul.f32 %v2303_v18, %v3084_v17 }
 0x601   : > { %v884_v3 = vpack.i.b16 %v883_v62, %v882_v58  ;;  %v888_v4 = vpack.i.b16 %v876_v59, %v842_v53  ;;  %v891_v5 = vshrl.u32 %v876_v59, 16  ;;  %v904_v47 = vpack.i.b16 %v877_v60, %v843_v57  ;;  %v2278_v59 = vld [vmem:[#allocation8] sm:$0xff]  }
 0x602   : > { %v900_v48 = vpack.i.b16 %v899_v2, %v898_v29  ;;  %v907_v51 = vshrl.u32 %v877_v60, 16  ;;  %v910_v6 = vcombine.low %v880_v61, %v896_v0  ;;  %v1217_v45 = vpack.c.bf16 %v1213_v35, %v1213_v35 }
 0x603   : > { %v892_v7 = vpack.i.b16 %v891_v5, %v890_v63  ;;  %v918_v8 = vcombine.low %v888_v4, %v904_v47 }
 0x604   : > { %v908_v10 = vpack.i.b16 %v907_v51, %v906_v49  ;;  %v935_v11 = vcombine.low %v884_v3, %v900_v48  ;;  %v917_v12 = vrot.slane %v910_v6, %v2976_v34 }
 0x605   : > { %v925_v13 = vrot.slane %v918_v8, %v2976_v34 }
 0x606   : > { %v943_v14 = vcombine.low %v892_v7, %v908_v10  ;;  %v942_v20 = vrot.slane %v935_v11, %v2976_v34 }
 0x607   : > { %v926_v31 = vcombine.low %v917_v12, %v925_v13 }
 0x608   : > { %v950_v19 = vrot.slane %v943_v14, %v2976_v34 }
 0x609   : > { %v933_v21 = vrot.slane %v926_v31, %v2987_v43 }
 0x60a   : > { %v951_v22 = vcombine.low %v942_v20, %v950_v19 }
 0x60b   : > { %v934_v23 = vcombine.high %v933_v21, %v2607_v54  ;;  %v963_v24 = vshrl.u32 %v933_v21, 16 }
 0x60c   : > { %v958_v27 = vrot.slane %v951_v22, %v2987_v43 }
 0x60d   : > { %v969_v36 = vshrl.u32 %v934_v23, 16 }
 0x60e   : > { %v962_v25 = vpack.i.b16 %v958_v27, %v933_v21  ;;  %v964_v26 = vshrl.u32 %v958_v27, 16  ;;  %v959_v33 = vcombine.high %v958_v27, %v2607_v54 }
 0x610   : > { %v1225_v37 = vsel %vm1223_vm4, %v962_v25, 0  ;;  %v965_v38 = vpack.i.b16 %v964_v26, %v963_v24  ;;  %v968_v39 = vpack.i.b16 %v959_v33, %v934_v23  ;;  %v970_v40 = vshrl.u32 %v959_v33, 16 }
 0x611   : > { %2095 = vmatpush3.bf16.msra.mxu1 %v1225_v37 }
 0x612   : > { %v1271_v41 = vsel %vm1223_vm4, %v965_v38, 0  ;;  %2106 = vmatprep.subr.bf16.mxu1 %v2599_v9  ;;  %v971_v16 = vpack.i.b16 %v970_v40, %v969_v36  ;;  %v1317_v44 = vsel %vm1223_vm4, %v968_v39, 0 }
 0x613   : > { %2101 = vmatpush3.bf16.msra.mxu0 %v1271_v41 }
 0x614   : > { %2097 = vmatmul.mubr.msk.bf16.vlgmr.msra.gmra.mrb[4].mxu1 %vm972_vm2, %v1216_v42  ;;  %2112 = vmatprep.subr.bf16.mxu0 %v2599_v9  ;;  %v1363_v17 = vsel %vm1223_vm4, %v971_v16, 0 }
 0x615   : > { %2107 = vmatpush3.bf16.msra.mxu1 %v1317_v44  ;;  %2108 = vmatprep.mubr.msk.bf16.mxu1 %vm2600_vm1, %v2599_v9 }
 0x616   : > { %2103 = vmatmul.mubr.msk.bf16.vlgmr.msra.gmra.mrb[16].mxu0 %vm972_vm2, %v1217_v45  ;;  %2118 = vmatprep.subr.bf16.mxu1 %v2599_v9 }
 0x617   : > { %2113 = vmatpush3.bf16.msra.mxu0 %v1363_v17  ;;  %2114 = vmatprep.mubr.msk.bf16.mxu0 %vm2600_vm1, %v2599_v9 }
 0x618   : > { %2126 = vmatprep.subr.bf16.mxu0 %v2599_v9 }
 0x625   : > { %v1203_v46 = vpop.xlane.xlu1 %1202 }
 0x626   : > { %2304 = vrcp.f32 %v1203_v46 }
 0x629   : > { %v1200_v50 = vpop.xlane.xlu0 %1199 }
 0x62a   : > { %2306 = vrcp.f32 %v1200_v50 }
 0x630   : > { %v2305_v52 = vpop.eup %2304 }
 0x631   : > { %v1215_v53 = vmul.f32 %v2305_v52, %v3091_v28 }
 0x633   : > { %v1219_v55 = vpack.c.bf16 %v1215_v53, %v1215_v53 }
 0x634   : > { %v2307_v56 = vpop.eup %2306 }
 0x635   : > { %v1214_v57 = vmul.f32 %v2307_v56, %v3095_v32  ;;  %2115 = vmatmul.mubr.msk.bf16.vlgmr.msra.gmra.mrb[20].mxu0 %vm972_vm2, %v1219_v55 }
 0x636   : > { %2130 = vmatprep.mubr.msk.bf16.mxu0 %vm2600_vm1, %v2599_v9 }
 0x637   : > { %v1218_v58 = vpack.c.bf16 %v1214_v57, %v1214_v57 }
 0x639   : > { %2109 = vmatmul.mubr.msk.bf16.vlgmr.msra.gmra.mrb[8].mxu1 %vm972_vm2, %v1218_v58  ;;  %v2279_v58 = vld [vmem:[#allocation8 + $0x8] sm:$0xff]  }
 0x63a   : > { %2122 = vmatprep.mubr.msk.bf16.mxu1 %vm2600_vm1, %v2599_v9  ;;  %2119 = vmatpush3.bf16.msra.mxu1 %v2278_v59 }
 0x63b   : > { %2120 = vmatprep.subr.bf16.mxu1 %v2599_v9 }
 0x63e   : > { %2121 = vmatpush3.bf16.msra.mxu1 %v2279_v58 }
 0x63f   : > { %2134 = vmatprep.subr.bf16.mxu1 %v2599_v9 }
 0x6e7   : > { %v1261_v28 = vpop.f32.mrb[4].mxu1 }
 0x6e8   : > { %v2098_v60 = vpop.f32.mrb[5].mxu1  ;;  %v1405_v6 = vpack.c.bf16 %v1261_v28, %v1261_v28 }
 0x6e9   : > { %v1264_v61 = vpop.f32.mrb[6].mxu1  ;;  %v1307_v62 = vpop.f32.mrb[16].mxu0 }
 0x6ea   : > { %v2099_v32 = vpop.f32.mrb[7].mxu1  ;;  %v2104_v63 = vpop.f32.mrb[17].mxu0  ;;  %v1439_v2 = vpack.c.bf16 %v1307_v62, %v1307_v62  ;;  %v1412_v18 = vrot.slane %v1405_v6, %v2976_v34 }
 0x6eb   : > { %v1310_v29 = vpop.f32.mrb[18].mxu0 }
 0x6ec   : > { %v2105_v0 = vpop.f32.mrb[19].mxu0  ;;  %v1446_v49 = vrot.slane %v1439_v2, %v2976_v34 }
 0x708   : > { %v1399_v3 = vpop.f32.mrb[20].mxu0 }
 0x709   : > { %v1447_v4 = vpack.c.bf16 %v1399_v3, %v1399_v3  ;;  %v2116_v5 = vpop.f32.mrb[21].mxu0 }
 0x70a   : > { %v1402_v47 = vpop.f32.mrb[22].mxu0 }
 0x70b   : > { %v1454_v48 = vrot.slane %v1447_v4, %v2976_v34  ;;  %v2117_v51 = vpop.f32.mrb[23].mxu0 }
 0x70c   : > { %v1353_v7 = vpop.f32.mrb[8].mxu1 }
 0x70d   : > { %v1455_v8 = vcombine.low %v1446_v49, %v1454_v48  ;;  %v1456_v10 = vcombine.high %v1446_v49, %v1454_v48  ;;  %v1413_v11 = vpack.c.bf16 %v1353_v7, %v1353_v7  ;;  %v2110_v12 = vpop.f32.mrb[9].mxu1 }
 0x70e   : > { %v1356_v13 = vpop.f32.mrb[10].mxu1 }
 0x70f   : > { %v1463_v14 = vrot.slane %v1455_v8, %v2987_v43  ;;  %v1420_v15 = vrot.slane %v1413_v11, %v2976_v34  ;;  %v2111_v31 = vpop.f32.mrb[11].mxu1  ;;  %v1470_v20 = vrot.slane %v1456_v10, %v2987_v43 }
 0x711   : > { %v1421_v19 = vcombine.low %v1412_v18, %v1420_v15  ;;  %v1422_v21 = vcombine.high %v1412_v18, %v1420_v15  ;;  %v1471_v22 = vcombine.high %v1463_v14, %v2607_v54  ;;  %v1472_v30 = vcombine.high %v1470_v20, %v2607_v54 }
 0x712   : > { %v1478_v25 = vshrl.u32 %v1463_v14, 16  ;;  %v1494_v37 = vshrl.u32 %v1470_v20, 16 }
 0x713   : > { %v1429_v23 = vrot.slane %v1421_v19, %v2987_v43  ;;  %v1436_v27 = vrot.slane %v1422_v21, %v2987_v43  ;;  %v1486_v36 = vshrl.u32 %v1471_v22, 16  ;;  %v1502_v44 = vshrl.u32 %v1472_v30, 16 }
 0x715   : > { %v1437_v24 = vcombine.high %v1429_v23, %v2607_v54  ;;  %v1438_v26 = vcombine.high %v1436_v27, %v2607_v54  ;;  %v1475_v33 = vpack.i.b16 %v1463_v14, %v1429_v23  ;;  %v1477_v35 = vshrl.u32 %v1429_v23, 16  ;;  %v2282_v23 = vld [vmem:[#allocation13] sm:$0xff]  }
 0x716   : > { %v1491_v38 = vpack.i.b16 %v1470_v20, %v1436_v27  ;;  %v1493_v39 = vshrl.u32 %v1436_v27, 16  ;;  %v2283_v27 = vld [vmem:[#allocation13 + $0x8] sm:$0xff]  }
 0x717   : > { %v1479_v40 = vpack.i.b16 %v1478_v25, %v1477_v35  ;;  %v1483_v41 = vpack.i.b16 %v1471_v22, %v1437_v24  ;;  %v1485_v42 = vshrl.u32 %v1437_v24, 16  ;;  %v1499_v16 = vpack.i.b16 %v1472_v30, %v1438_v26  ;;  %v2280_v22 = vld [vmem:[#allocation11] sm:$0xff]   ;;  %v2012_v35 = vld [vmem:[#allocation10] ss:$0 sm:$0xff] }
 0x718   : > { %v1495_v45 = vpack.i.b16 %v1494_v37, %v1493_v39  ;;  %v1501_v17 = vshrl.u32 %v1438_v26, 16  ;;  %v1505_v46 = vcombine.low %v1475_v33, %v1491_v38  ;;  %2127 = vmatpush3.bf16.msra.mxu0 %v2280_v22  ;;  %v2284_v30 = vld [vmem:[#allocation13 + $0x10] sm:$0xff]   ;;  %v2285_v39 = vld [vmem:[#allocation13 + $0x18] sm:$0xff]  }
 0x719   : > { %v1487_v50 = vpack.i.b16 %v1486_v36, %v1485_v42  ;;  %v1513_v52 = vcombine.low %v1483_v41, %v1499_v16  ;;  %2128 = vmatprep.subr.bf16.mxu0 %v2599_v9  ;;  %v2287_v41 = vld [vmem:[#allocation13 + $0x28] sm:$0xff]   ;;  %v2288_v42 = vld [vmem:[#allocation13 + $0x30] sm:$0xff]   ;;  %v2289_v16 = vld [vmem:[#allocation13 + $0x38] sm:$0xff]  }
 0x71a   : > { %v1503_v53 = vpack.i.b16 %v1502_v44, %v1501_v17  ;;  %v1530_v55 = vcombine.low %v1479_v40, %v1495_v45  ;;  %v1512_v56 = vrot.slane %v1505_v46, %v2976_v34  ;;  %v2286_v40 = vld [vmem:[#allocation13 + $0x20] sm:$0xff]  }
 0x71b   : > { %v1520_v57 = vrot.slane %v1513_v52, %v2976_v34 }
 0x71c   : > { %v1538_v59 = vcombine.low %v1487_v50, %v1503_v53  ;;  %v1537_v60 = vrot.slane %v1530_v55, %v2976_v34 }
 0x71d   : > { %v1521_v28 = vcombine.low %v1512_v56, %v1520_v57 }
 0x71e   : > { %v1545_v61 = vrot.slane %v1538_v59, %v2976_v34 }
 0x71f   : > { %v1528_v62 = vrot.slane %v1521_v28, %v2987_v43 }
 0x720   : > { %v1546_v32 = vcombine.low %v1537_v60, %v1545_v61 }
 0x721   : > { %v1529_v29 = vcombine.high %v1528_v62, %v2607_v54  ;;  %v1558_v0 = vshrl.u32 %v1528_v62, 16 }
 0x722   : > { %v1553_v63 = vrot.slane %v1546_v32, %v2987_v43 }
 0x723   : > { %v1564_v49 = vshrl.u32 %v1529_v29, 16 }
 0x724   : > { %v1559_v2 = vshrl.u32 %v1553_v63, 16  ;;  %v1554_v3 = vcombine.high %v1553_v63, %v2607_v54  ;;  %v1557_v4 = vpack.i.b16 %v1553_v63, %v1528_v62 }
 0x726   : > { %v1560_v5 = vpack.i.b16 %v1559_v2, %v1558_v0  ;;  %v1563_v47 = vpack.i.b16 %v1554_v3, %v1529_v29  ;;  %v1565_v48 = vshrl.u32 %v1554_v3, 16 }
 0x728   : > { %1567 = vrot.lane.b32.xlu0 %v1560_v5, %s2609_s29  ;;  %1569 = vrot.lane.b32.xlu1 %v1563_v47, %s2610_s22  ;;  %v1566_v34 = vpack.i.b16 %v1565_v48, %v1564_v49 }
 0x72c   : > { %1571 = vrot.lane.b32.xlu0 %v1566_v34, %s2611_s28 }
 0x79a   : > { %v1568_v51 = vpop.permute.xlu0 %1567  ;;  %v1570_v6 = vpop.permute.xlu1 %1569 }
 0x79b   : > { %v1575_v43 = vsel %vm972_vm2, %v1557_v4, %v1568_v51 }
 0x79c   : > { %v1578_v7 = vsel %vm1576_vm5, %v1575_v43, %v1570_v6 }
 0x79e   : > { %v1572_v54 = vpop.permute.xlu0 %1571 }
 0x79f   : > { %v1581_v8 = vsel %vm1579_vm6, %v1578_v7, %v1572_v54 }
 0x7a0   : > { %2123 = vmatmul.mubr.msk.bf16.vlgmr.msra.gmra.mrb[12].mxu1 %vm381_vm0, %v1581_v8 }
 0x7a1   : > { %2150 = vmatprep.mubr.msk.bf16.mxu1 %vm2600_vm1, %v2599_v9  ;;  %2135 = vmatpush3.bf16.msra.mxu1 %v2282_v23 }
 0x7a2   : > { %2136 = vmatprep.subr.bf16.mxu1 %v2599_v9 }
 0x7a5   : > { %2137 = vmatpush3.bf16.msra.mxu1 %v2283_v27 }
 0x7a6   : > { %2138 = vmatprep.subr.bf16.mxu1 %v2599_v9 }
 0x7a9   : > { %2139 = vmatpush3.bf16.msra.mxu1 %v2284_v30 }
 0x7aa   : > { %2140 = vmatprep.subr.bf16.mxu1 %v2599_v9 }
 0x7ad   : > { %2141 = vmatpush3.bf16.msra.mxu1 %v2285_v39 }
 0x7ae   : > { %2142 = vmatprep.subr.bf16.mxu1 %v2599_v9 }
 0x7b1   : > { %2143 = vmatpush3.bf16.msra.mxu1 %v2286_v40 }
 0x7b2   : > { %2144 = vmatprep.subr.bf16.mxu1 %v2599_v9 }
 0x7b5   : > { %2145 = vmatpush3.bf16.msra.mxu1 %v2287_v41 }
 0x7b6   : > { %2146 = vmatprep.subr.bf16.mxu1 %v2599_v9 }
 0x7b9   : > { %2147 = vmatpush3.bf16.msra.mxu1 %v2288_v42 }
 0x7ba   : > { %2148 = vmatprep.subr.bf16.mxu1 %v2599_v9 }
 0x7bd   : > { %2149 = vmatpush3.bf16.msra.mxu1 %v2289_v16 }
 0x873   : > { %v1634_v10 = vpop.f32.mrb[12].mxu1 }
 0x874   : > { %v3170_v11 = vadd.f32 %v1634_v10, %v2940_v1  ;;  %v2124_v12 = vpop.f32.mrb[13].mxu1  ;;  %v2281_v1 = vld [vmem:[#allocation11 + $0x8] sm:$0xff]  }
 0x875   : > { %v1637_v13 = vpop.f32.mrb[14].mxu1  ;;  %2129 = vmatpush3.bf16.msra.mxu0 %v2281_v1 }
 0x876   : > { %v2125_v14 = vpop.f32.mrb[15].mxu1  ;;  %v1642_v15 = vsel %vm381_vm0, %v3170_v11, 0.0 }
 0x877   : > { %1643 = vadd.xlane.f32.xlu1 %v1642_v15 }
 0x904   : > { %v1644_v31 = vpop.xlane.xlu1 %1643 }
 0x905   : > { %v1645_v18 = vmul.f32 0.03125, %v1644_v31 }
 0x907   : > { %v1646_v20 = vsub.f32 %v3170_v11, %v1645_v18 }
 0x909   : > { %v1647_v19 = vmul.f32 %v1646_v20, %v1646_v20 }
 0x90b   : > { %v1648_v21 = vsel %vm381_vm0, %v1647_v19, 0.0 }
 0x90c   : > { %1649 = vadd.xlane.f32.xlu0 %v1648_v21 }
 0x999   : > { %v1650_v25 = vpop.xlane.xlu0 %1649 }
 0x99a   : > { %v1651_v24 = vmul.f32 0.03125, %v1650_v25 }
 0x99c   : > { %v1652_v26 = vadd.f32 1e-05, %v1651_v24 }
 0x99e   : > { %2308 = vrsqrt.f32 %v1652_v26 }
 0x9a8   : > { %v2309_v33 = vpop.eup %2308 }
 0x9a9   : > { %v1654_v36 = vmul.f32 %v2309_v33, %v1646_v20 }
 0x9ab   : > { %v1661_v37 = vmul.f32 %v2012_v35, %v1654_v36 }
 0x9ad   : > { %v1662_v38 = vpack.c.bf16 %v1661_v37, %v1661_v37 }
 0x9af   : > { %2131 = vmatmul.mubr.msk.bf16.vlgmr.msra.gmra.mrb[24].mxu0 %vm381_vm0, %v1662_v38 }
 0xa82   : > { %v1716_v44 = vpop.f32.mrb[24].mxu0 }
 0xa83   : > { %v1723_v45 = vmul.f32 0.70710677, %v1716_v44  ;;  %v2132_v17 = vpop.f32.mrb[25].mxu0  ;;  %v1722_v53 = vmul.f32 0.5, %v1716_v44 }
 0xa84   : > { %v1719_v46 = vpop.f32.mrb[26].mxu0 }
 0xa85   : > { %2310 = verf.f32 %v1723_v45  ;;  %v2133_v50 = vpop.f32.mrb[27].mxu0 }
 0xa8f   : > { %v2311_v52 = vpop.eup %2310 }
 0xa90   : > { %v1725_v55 = vadd.f32 1.0, %v2311_v52 }
 0xa92   : > { %v1726_v56 = vmul.f32 %v1725_v55, %v1722_v53 }
 0xa94   : > { %v1727_v57 = vpack.c.bf16 %v1726_v56, %v1726_v56 }
 0xa96   : > { %2151 = vmatmul.mubr.bf16.vlgmr.msra.gmra.mrb[16].mxu1 %v1727_v57 }
 0xb69   : > { %v1826_v58 = vpop.f32.mrb[16].mxu1 }
 0xb6a   : > { %v1832_v9 = vadd.f32 %v1826_v58, %v3170_v11  ;;  %v2152_v59 = vpop.f32.mrb[17].mxu1 }
 0xb6b   : > { %v1829_v28 = vpop.f32.mrb[18].mxu1 }
 0xb6c   : > { %v1833_v60 = vpack.c.bf16 %v1832_v9, %v1832_v9  ;;  %v2153_v61 = vpop.f32.mrb[19].mxu1 }
 0xb6e   : > { %1835 = vst.msk [vmem:[%s376_s18] sm:$0xf] %vm1834_vm7, %v1833_v60 }
 0xb6f   : > { %2523 = shalt.err (!%p2520_p3)
}
 0xb70   : > { %s2524_s23 = scalar_lea.hbm %s3192_s21, 64  ;;  %s2528_s28 = scalar_lea.hbm %s3243_s7, 128 }
 0xb71   : > { %p2525_p10 = scmp.ne.s32.totalorder %s3192_s21, %s2524_s23  ;;  %p2529_p8 = scmp.lt.u32.totalorder %s3192_s21, %s3243_s7 }
 0xb72   : > { %p2530_p5 = scmp.lt.u32.totalorder %s2528_s28, %s2524_s23  ;;  %p2532_p6 = scmp.lt.u32.totalorder %s2524_s23, %s3192_s21 }
 0xb73   : > { %p2526_p11 = pnand %p2525_p10, %p3263_p9 }
 0xb74   : > { %p2531_p7 = por %p2530_p5, %p2529_p8 }
 0xb75   : > { %p2527_p12 = pneg %p2526_p11 }
 0xb76   : > { %p2533_p4 = por %p2532_p6, %p2531_p7 }
 0xb78   : > { %p2534_p1 = pnand %p2533_p4, %p2527_p12 }
 0xb7a   : > { %2537 = shalt.err (!%p2534_p1)
}
 0xb7b   : > { %2180 = dma.vmem_to_hbm [thread:$0]  (%p3263_p9), %s3194_s15, 64, %s3192_s21, %s1837_s30  }
 0xb7c PF: > { %s1862_s20 = sand.u32 1, %s2576_s24   ;;  %p3264_p13 = scmp.ne.s32.totalorder %s3254_s16, 0 }
 0xb7d   : > { %p3265_p0 = scmp.ge.s32.totalorder %s2588_s27, 2  ;;  %s1863_s8 = scalar_lea.sflag [#allocation4], %s1862_s20 }
 0xb7f   : > { %p2206_p2 = pnand %p3265_p0, %p3264_p13 }
 0xb81   : > { %2571 = dma.done.wait (!%p2206_p2), %s1863_s8, 64  }
 0xb82   : > { %2573 = vsyncadd (!%p2206_p2), %s1863_s8, 4294967232  ;;  %p23_p3 = scmp.ge.s32.totalorder %s2842_s19, 4   ;;  %s3266_s24 = smov %s2580_s25 }
 0xb83   : > { %s3267_s25 = smov %s2584_s26  ;;  %s3268_s26 = smov %s2853_s14 }
 0xb84   : > { %s3269_s27 = smov %s2842_s19  ;;  %25 = sbr.rel (!%p23_p3) target bundleno = 8 (0x8), region = 117 }
 0xb8b   :  { %1868 = vsyncpa [#allocation3], 1 }
 0xb8c   :  { %1870 = vsyncpa [#allocation3 + $0x1], 1 }
 0xb8d   :  { %1871 = vsyncpa [#allocation6], 1 }
 0xb8e   :  { %1872 = vsyncpa [#allocation9], 1 }
 0xb8f   :  { %1873 = vsyncpa [#allocation12], 1 }
 0xb90   :  { %1874 = vsyncpa [#allocation4], 1 }
 0xb91   :  { %1876 = vsyncpa [#allocation4 + $0x1], 1 }

</bundles_post_ra>
